<compile_context>
chip_gen: v6e
topology: v6e:2x2x1
jax: 0.10.0
libtpu: 0.0.40
codegen_flags: <defaults>
</compile_context>

<pallas_src>
import functools
import math

import jax
import jax.numpy as jnp
from jax import lax
from jax.experimental import pallas as pl
from jax.experimental.pallas import tpu as pltpu

EPS = 1e-5                      # nn.LayerNorm default eps
_GELU_C = math.sqrt(2.0 / math.pi)

_WEIGHT_ORDER = (
    "attn_ln_w", "attn_ln_b", "wq", "wk", "wv", "wo", "bo",
    "ff_ln_w", "ff_ln_b", "w1", "b1", "w2", "b2",
)


def _layernorm(x, w, b):
    # PyTorch LayerNorm: biased variance over the last dim, f32 math.
    mean = jnp.mean(x, axis=-1, keepdims=True)
    var = jnp.mean(jnp.square(x - mean), axis=-1, keepdims=True)
    return (x - mean) * lax.rsqrt(var + EPS) * w + b


def _transformer_kernel(x_ref,
                        alnw_ref, alnb_ref, wq_ref, wk_ref, wv_ref, wo_ref,
                        bo_ref, flnw_ref, flnb_ref, w1_ref, b1_ref, w2_ref,
                        b2_ref, o_ref, acc_ref, *, heads, scale):
    """One grid step = one (batch element, layer): Residual(PreNorm(Attn)) + Residual(PreNorm(FF))."""
    layer = pl.program_id(1)

    # Load the input into the resident residual-stream scratch at the first layer.
    @pl.when(layer == 0)
    def _():
        acc_ref[...] = x_ref[0].astype(jnp.float32)

    x = acc_ref[...]                                          # (N, D) f32 residual stream

    # ---------------- Residual(PreNorm(Attention)) ----------------
    # TODO(synk): boolean attention-mask path not implemented (mask=None assumed).
    xn = _layernorm(x, alnw_ref[0], alnb_ref[0])              # (N, D) f32
    xn_b = xn.astype(jnp.bfloat16)

    attn_out = jnp.zeros_like(x)
    for h in range(heads):                                    # static loop; weights pre-split per head
        q = jnp.dot(xn_b, wq_ref[0, h], preferred_element_type=jnp.float32)   # (N, dh)
        k = jnp.dot(xn_b, wk_ref[0, h], preferred_element_type=jnp.float32)   # (N, dh)
        v = jnp.dot(xn_b, wv_ref[0, h], preferred_element_type=jnp.float32)   # (N, dh)
        # q @ k^T via dot_general contracting last dims (no explicit transpose).
        dots = lax.dot_general(q.astype(jnp.bfloat16), k.astype(jnp.bfloat16),
                               (((1,), (1,)), ((), ())),
                               preferred_element_type=jnp.float32) * scale     # (N, N)
        m = jnp.max(dots, axis=-1, keepdims=True)
        e = jnp.exp(dots - m)
        probs = e * pl.reciprocal(jnp.sum(e, axis=-1, keepdims=True), approx=True)
        ctx = jnp.dot(probs.astype(jnp.bfloat16), v.astype(jnp.bfloat16),
                      preferred_element_type=jnp.float32)                      # (N, dh)
        # Accumulate this head's contribution through its slice of W_out (no concat).
        attn_out = attn_out + jnp.dot(ctx.astype(jnp.bfloat16), wo_ref[0, h],
                                      preferred_element_type=jnp.float32)      # (N, D)
    x = x + attn_out + bo_ref[0]

    # ---------------- Residual(PreNorm(FeedForward)) ----------------
    xn = _layernorm(x, flnw_ref[0], flnb_ref[0])
    h1 = jnp.dot(xn.astype(jnp.bfloat16), w1_ref[0],
                 preferred_element_type=jnp.float32) + b1_ref[0]               # (N, mlp)
    # Custom tanh-approximation GELU from the module, in f32.
    g = 0.5 * h1 * (1.0 + jnp.tanh(_GELU_C * (h1 + 0.044715 * h1 * h1 * h1)))
    y = jnp.dot(g.astype(jnp.bfloat16), w2_ref[0],
                preferred_element_type=jnp.float32) + b2_ref[0]                # (N, D)
    x = x + y

    acc_ref[...] = x

    # Single HBM store per batch element, at the last layer.
    @pl.when(layer == pl.num_programs(1) - 1)
    def _():
        o_ref[0] = x.astype(o_ref.dtype)


def transformer_forward(x, packed, *, heads, dim_head):
    B, N, D = x.shape
    depth = packed["wq"].shape[0]

    def weight_spec(arr):
        ndim = arr.ndim
        return pl.BlockSpec((1,) + arr.shape[1:],
                            lambda p, l, _n=ndim: (l,) + (0,) * (_n - 1))

    kernel = functools.partial(_transformer_kernel, heads=heads,
                               scale=dim_head ** -0.5)
    return pl.pallas_call(
        kernel,
        out_shape=jax.ShapeDtypeStruct((B, N, D), x.dtype),
        grid_spec=pltpu.PrefetchScalarGridSpec(
            num_scalar_prefetch=0,
            grid=(B, depth),                                  # (parallel, arbitrary)
            in_specs=[pl.BlockSpec((1, N, D), lambda p, l: (p, 0, 0))]
                     + [weight_spec(packed[k]) for k in _WEIGHT_ORDER],
            out_specs=pl.BlockSpec((1, N, D), lambda p, l: (p, 0, 0)),
            scratch_shapes=[pltpu.VMEM((N, D), jnp.float32)],  # residual stream, resident across layers
        ),
        compiler_params=pltpu.CompilerParams(
            dimension_semantics=("parallel", "arbitrary")),
        input_output_aliases={0: 0},                          # update the residual stream in place
    )(x, *[packed[k] for k in _WEIGHT_ORDER])


def init_transformer_params(key, dim, depth, heads, dim_head, mlp_dim):
    """Per-layer parameters in PyTorch (out_features, in_features) convention."""
    inner = heads * dim_head
    layers = []
    for _ in range(depth):
        key, k1, k2, k3, k4 = jax.random.split(key, 5)
        layers.append({
            "attn_ln_w": jnp.ones((dim,), jnp.float32),
            "attn_ln_b": jnp.zeros((dim,), jnp.float32),
            "w_qkv": jax.random.normal(k1, (3 * inner, dim), jnp.float32) / math.sqrt(dim),
            "w_out": jax.random.normal(k2, (dim, inner), jnp.float32) / math.sqrt(inner),
            "b_out": jnp.zeros((dim,), jnp.float32),
            "ff_ln_w": jnp.ones((dim,), jnp.float32),
            "ff_ln_b": jnp.zeros((dim,), jnp.float32),
            "w1": jax.random.normal(k3, (mlp_dim, dim), jnp.float32) / math.sqrt(dim),
            "b1": jnp.zeros((mlp_dim,), jnp.float32),
            "w2": jax.random.normal(k4, (dim, mlp_dim), jnp.float32) / math.sqrt(mlp_dim),
            "b2": jnp.zeros((dim,), jnp.float32),
        })
    return layers


def pack_params(layers, *, heads, dim_head):
    """Stack per-layer params along depth; split qkv/out weights per head; cast matmul weights to bf16."""
    dim = layers[0]["attn_ln_w"].shape[0]
    mlp_dim = layers[0]["b1"].shape[0]
    inner = heads * dim_head
    packed = {k: [] for k in _WEIGHT_ORDER}
    for p in layers:
        wqkv_t = p["w_qkv"].T                                 # (dim, 3*inner): x @ W.T
        qw, kw, vw = (wqkv_t[:, i * inner:(i + 1) * inner] for i in range(3))

        def to_heads(w):                                      # (dim, inner) -> (heads, dim, dh)
            return w.reshape(dim, heads, dim_head).transpose(1, 0, 2).astype(jnp.bfloat16)

        packed["wq"].append(to_heads(qw))
        packed["wk"].append(to_heads(kw))
        packed["wv"].append(to_heads(vw))
        packed["wo"].append(p["w_out"].T.reshape(heads, dim_head, dim).astype(jnp.bfloat16))
        packed["bo"].append(p["b_out"].reshape(1, dim))
        packed["attn_ln_w"].append(p["attn_ln_w"].reshape(1, dim))
        packed["attn_ln_b"].append(p["attn_ln_b"].reshape(1, dim))
        packed["ff_ln_w"].append(p["ff_ln_w"].reshape(1, dim))
        packed["ff_ln_b"].append(p["ff_ln_b"].reshape(1, dim))
        packed["w1"].append(p["w1"].T.astype(jnp.bfloat16))   # (dim, mlp_dim)
        packed["b1"].append(p["b1"].reshape(1, mlp_dim))
        packed["w2"].append(p["w2"].T.astype(jnp.bfloat16))   # (mlp_dim, dim)
        packed["b2"].append(p["b2"].reshape(1, dim))
    return {k: jnp.stack(v, axis=0) for k, v in packed.items()}


if __name__ == "__main__":
    # Small shapes consistent with the module's forward: x is (B, N, dim).
    B, N = 2, 8
    dim, depth, heads, dim_head, mlp_dim = 32, 2, 4, 16, 64

    key = jax.random.PRNGKey(0)
    key, kx, kp = jax.random.split(key, 3)
    x = jax.random.normal(kx, (B, N, dim), jnp.float32)
    layers = init_transformer_params(kp, dim, depth, heads, dim_head, mlp_dim)
    packed = pack_params(layers, heads=heads, dim_head=dim_head)

    fwd = jax.jit(functools.partial(transformer_forward, heads=heads, dim_head=dim_head))
    out = jax.block_until_ready(fwd(x, packed))

    assert out.shape == (B, N, dim)
    assert bool(jnp.all(jnp.isfinite(out)))
    print("KERNEL_OK")
</pallas_src>

<mosaic_0001>
module attributes {stable_mosaic.version = 11 : i64} {
  func.func @_transformer_kernel(%arg0: i32, %arg1: i32, %arg2: memref<1x8x32xf32, #tpu.memory_space<vmem>>, %arg3: memref<1x1x32xf32, #tpu.memory_space<vmem>>, %arg4: memref<1x1x32xf32, #tpu.memory_space<vmem>>, %arg5: memref<1x4x32x16xbf16, #tpu.memory_space<vmem>>, %arg6: memref<1x4x32x16xbf16, #tpu.memory_space<vmem>>, %arg7: memref<1x4x32x16xbf16, #tpu.memory_space<vmem>>, %arg8: memref<1x4x16x32xbf16, #tpu.memory_space<vmem>>, %arg9: memref<1x1x32xf32, #tpu.memory_space<vmem>>, %arg10: memref<1x1x32xf32, #tpu.memory_space<vmem>>, %arg11: memref<1x1x32xf32, #tpu.memory_space<vmem>>, %arg12: memref<1x32x64xbf16, #tpu.memory_space<vmem>>, %arg13: memref<1x1x64xf32, #tpu.memory_space<vmem>>, %arg14: memref<1x64x32xbf16, #tpu.memory_space<vmem>>, %arg15: memref<1x1x32xf32, #tpu.memory_space<vmem>>, %arg16: memref<1x8x32xf32, #tpu.memory_space<vmem>>, %arg17: memref<8x32xf32, #tpu.memory_space<vmem>>) attributes {dimension_semantics = [#tpu.dimension_semantics<parallel>, #tpu.dimension_semantics<arbitrary>], iteration_bounds = array<i64: 2, 2>, scalar_prefetch = 0 : i64, scratch_operands = 1 : i64, tpu.core_type = #tpu.core_type<tc>, window_params = [{transform_indices = @transform_0, window_bounds = array<i64: 1, 8, 32>}, {transform_indices = @transform_1, window_bounds = array<i64: 1, 1, 32>}, {transform_indices = @transform_2, window_bounds = array<i64: 1, 1, 32>}, {transform_indices = @transform_3, window_bounds = array<i64: 1, 4, 32, 16>}, {transform_indices = @transform_4, window_bounds = array<i64: 1, 4, 32, 16>}, {transform_indices = @transform_5, window_bounds = array<i64: 1, 4, 32, 16>}, {transform_indices = @transform_6, window_bounds = array<i64: 1, 4, 16, 32>}, {transform_indices = @transform_7, window_bounds = array<i64: 1, 1, 32>}, {transform_indices = @transform_8, window_bounds = array<i64: 1, 1, 32>}, {transform_indices = @transform_9, window_bounds = array<i64: 1, 1, 32>}, {transform_indices = @transform_10, window_bounds = array<i64: 1, 32, 64>}, {transform_indices = @transform_11, window_bounds = array<i64: 1, 1, 64>}, {transform_indices = @transform_12, window_bounds = array<i64: 1, 64, 32>}, {transform_indices = @transform_13, window_bounds = array<i64: 1, 1, 32>}, {transform_indices = @transform_14, window_bounds = array<i64: 1, 8, 32>}]} {
    %c0_i32 = arith.constant 0 : i32
    %0 = arith.cmpi eq, %arg1, %c0_i32 : i32
    %1 = arith.extui %0 : i1 to i32
    %c0_i32_0 = arith.constant 0 : i32
    %2 = arith.cmpi ne, %1, %c0_i32_0 : i32
    scf.if %2 {
      %c0_145 = arith.constant 0 : index
      %c0_146 = arith.constant 0 : index
      %c0_147 = arith.constant 0 : index
      %225 = vector.load %arg2[%c0_145, %c0_146, %c0_147] : memref<1x8x32xf32, #tpu.memory_space<vmem>>, vector<1x8x32xf32>
      %226 = vector.shape_cast %225 : vector<1x8x32xf32> to vector<8x32xf32>
      %c0_148 = arith.constant 0 : index
      %c0_149 = arith.constant 0 : index
      %227 = vector.load %arg17[%c0_148, %c0_149] : memref<8x32xf32, #tpu.memory_space<vmem>>, vector<8x32xf32>
      tpu.vector_store %arg17[%c0_148, %c0_149], %226 {strides = array<i32>} : memref<8x32xf32, #tpu.memory_space<vmem>>, vector<8x32xf32>,
    } else {
    }
    %c0 = arith.constant 0 : index
    %c0_1 = arith.constant 0 : index
    %3 = vector.load %arg17[%c0, %c0_1] : memref<8x32xf32, #tpu.memory_space<vmem>>, vector<8x32xf32>
    %c0_2 = arith.constant 0 : index
    %c0_3 = arith.constant 0 : index
    %c0_4 = arith.constant 0 : index
    %4 = vector.load %arg3[%c0_2, %c0_3, %c0_4] : memref<1x1x32xf32, #tpu.memory_space<vmem>>, vector<1x1x32xf32>
    %5 = vector.shape_cast %4 : vector<1x1x32xf32> to vector<1x32xf32>
    %c0_5 = arith.constant 0 : index
    %c0_6 = arith.constant 0 : index
    %c0_7 = arith.constant 0 : index
    %6 = vector.load %arg4[%c0_5, %c0_6, %c0_7] : memref<1x1x32xf32, #tpu.memory_space<vmem>>, vector<1x1x32xf32>
    %7 = vector.shape_cast %6 : vector<1x1x32xf32> to vector<1x32xf32>
    %cst = arith.constant dense<0.000000e+00> : vector<8xf32>
    %8 = vector.multi_reduction <add>, %3, %cst [1] : vector<8x32xf32> to vector<8xf32>
    %9 = vector.shape_cast %8 : vector<8xf32> to vector<8x1xf32>
    %cst_8 = arith.constant 3.200000e+01 : f32
    %10 = vector.broadcast %cst_8 : f32 to vector<8x1xf32>
    %11 = arith.divf %9, %10 : vector<8x1xf32>
    %12 = vector.broadcast %11 : vector<8x1xf32> to vector<8x32xf32>
    %13 = arith.subf %3, %12 : vector<8x32xf32>
    %14 = arith.mulf %13, %13 : vector<8x32xf32>
    %cst_9 = arith.constant dense<0.000000e+00> : vector<8xf32>
    %15 = vector.multi_reduction <add>, %14, %cst_9 [1] : vector<8x32xf32> to vector<8xf32>
    %16 = vector.shape_cast %15 : vector<8xf32> to vector<8x1xf32>
    %cst_10 = arith.constant 3.200000e+01 : f32
    %17 = vector.broadcast %cst_10 : f32 to vector<8x1xf32>
    %18 = arith.divf %16, %17 : vector<8x1xf32>
    %19 = vector.broadcast %11 : vector<8x1xf32> to vector<8x32xf32>
    %20 = arith.subf %3, %19 : vector<8x32xf32>
    %cst_11 = arith.constant 9.99999974E-6 : f32
    %21 = vector.broadcast %cst_11 : f32 to vector<8x1xf32>
    %22 = arith.addf %18, %21 : vector<8x1xf32>
    %23 = math.rsqrt %22 : vector<8x1xf32>
    %24 = vector.broadcast %23 : vector<8x1xf32> to vector<8x32xf32>
    %25 = arith.mulf %20, %24 : vector<8x32xf32>
    %26 = vector.broadcast %5 : vector<1x32xf32> to vector<8x32xf32>
    %27 = arith.mulf %25, %26 : vector<8x32xf32>
    %28 = vector.broadcast %7 : vector<1x32xf32> to vector<8x32xf32>
    %29 = arith.addf %27, %28 : vector<8x32xf32>
    %30 = arith.truncf %29 : vector<8x32xf32> to vector<8x32xbf16>
    %cst_12 = arith.constant 0.000000e+00 : f32
    %31 = vector.broadcast %cst_12 : f32 to vector<8x32xf32>
    %c0_13 = arith.constant 0 : index
    %c0_14 = arith.constant 0 : index
    %c0_15 = arith.constant 0 : index
    %c0_16 = arith.constant 0 : index
    %32 = vector.load %arg5[%c0_13, %c0_14, %c0_15, %c0_16] : memref<1x4x32x16xbf16, #tpu.memory_space<vmem>>, vector<1x1x32x16xbf16>
    %33 = vector.shape_cast %32 : vector<1x1x32x16xbf16> to vector<32x16xbf16>
    %cst_17 = arith.constant dense<0.000000e+00> : vector<8x16xf32>
    %34 = tpu.matmul %30, %33, %cst_17 {dimension_numbers = #tpu.dot_dimension_numbers<[1], [0], [0], [1], [0, 0, 1, 1], [], []>} : vector<8x32xbf16>, vector<32x16xbf16>, vector<8x16xf32> -> vector<8x16xf32>
    %c0_18 = arith.constant 0 : index
    %c0_19 = arith.constant 0 : index
    %c0_20 = arith.constant 0 : index
    %c0_21 = arith.constant 0 : index
    %35 = vector.load %arg6[%c0_18, %c0_19, %c0_20, %c0_21] : memref<1x4x32x16xbf16, #tpu.memory_space<vmem>>, vector<1x1x32x16xbf16>
    %36 = vector.shape_cast %35 : vector<1x1x32x16xbf16> to vector<32x16xbf16>
    %cst_22 = arith.constant dense<0.000000e+00> : vector<8x16xf32>
    %37 = tpu.matmul %30, %36, %cst_22 {dimension_numbers = #tpu.dot_dimension_numbers<[1], [0], [0], [1], [0, 0, 1, 1], [], []>} : vector<8x32xbf16>, vector<32x16xbf16>, vector<8x16xf32> -> vector<8x16xf32>
    %c0_23 = arith.constant 0 : index
    %c0_24 = arith.constant 0 : index
    %c0_25 = arith.constant 0 : index
    %c0_26 = arith.constant 0 : index
    %38 = vector.load %arg7[%c0_23, %c0_24, %c0_25, %c0_26] : memref<1x4x32x16xbf16, #tpu.memory_space<vmem>>, vector<1x1x32x16xbf16>
    %39 = vector.shape_cast %38 : vector<1x1x32x16xbf16> to vector<32x16xbf16>
    %cst_27 = arith.constant dense<0.000000e+00> : vector<8x16xf32>
    %40 = tpu.matmul %30, %39, %cst_27 {dimension_numbers = #tpu.dot_dimension_numbers<[1], [0], [0], [1], [0, 0, 1, 1], [], []>} : vector<8x32xbf16>, vector<32x16xbf16>, vector<8x16xf32> -> vector<8x16xf32>
    %41 = arith.truncf %34 : vector<8x16xf32> to vector<8x16xbf16>
    %42 = arith.truncf %37 : vector<8x16xf32> to vector<8x16xbf16>
    %cst_28 = arith.constant dense<0.000000e+00> : vector<8x8xf32>
    %43 = tpu.matmul %41, %42, %cst_28 {dimension_numbers = #tpu.dot_dimension_numbers<[1], [1], [0], [0], [0, 0, 1, 0], [], []>} : vector<8x16xbf16>, vector<8x16xbf16>, vector<8x8xf32> -> vector<8x8xf32>
    %cst_29 = arith.constant 2.500000e-01 : f32
    %44 = vector.broadcast %cst_29 : f32 to vector<8x8xf32>
    %45 = arith.mulf %43, %44 : vector<8x8xf32>
    %cst_30 = arith.constant dense<0xFF800000> : vector<8xf32>
    %46 = vector.multi_reduction <maximumf>, %45, %cst_30 [1] : vector<8x8xf32> to vector<8xf32>
    %47 = vector.shape_cast %46 : vector<8xf32> to vector<8x1xf32>
    %48 = vector.broadcast %47 : vector<8x1xf32> to vector<8x8xf32>
    %49 = arith.subf %45, %48 : vector<8x8xf32>
    %50 = math.exp %49 : vector<8x8xf32>
    %cst_31 = arith.constant dense<0.000000e+00> : vector<8xf32>
    %51 = vector.multi_reduction <add>, %50, %cst_31 [1] : vector<8x8xf32> to vector<8xf32>
    %52 = vector.shape_cast %51 : vector<8xf32> to vector<8x1xf32>
    %53 = tpu.reciprocal %52 {approx = true} : vector<8x1xf32> -> vector<8x1xf32>
    %54 = vector.broadcast %53 : vector<8x1xf32> to vector<8x8xf32>
    %55 = arith.mulf %50, %54 : vector<8x8xf32>
    %56 = arith.truncf %55 : vector<8x8xf32> to vector<8x8xbf16>
    %57 = arith.truncf %40 : vector<8x16xf32> to vector<8x16xbf16>
    %cst_32 = arith.constant dense<0.000000e+00> : vector<8x16xf32>
    %58 = tpu.matmul %56, %57, %cst_32 {dimension_numbers = #tpu.dot_dimension_numbers<[1], [0], [0], [1], [0, 0, 1, 1], [], []>} : vector<8x8xbf16>, vector<8x16xbf16>, vector<8x16xf32> -> vector<8x16xf32>
    %59 = arith.truncf %58 : vector<8x16xf32> to vector<8x16xbf16>
    %c0_33 = arith.constant 0 : index
    %c0_34 = arith.constant 0 : index
    %c0_35 = arith.constant 0 : index
    %c0_36 = arith.constant 0 : index
    %60 = vector.load %arg8[%c0_33, %c0_34, %c0_35, %c0_36] : memref<1x4x16x32xbf16, #tpu.memory_space<vmem>>, vector<1x1x16x32xbf16>
    %61 = vector.shape_cast %60 : vector<1x1x16x32xbf16> to vector<16x32xbf16>
    %cst_37 = arith.constant dense<0.000000e+00> : vector<8x32xf32>
    %62 = tpu.matmul %59, %61, %cst_37 {dimension_numbers = #tpu.dot_dimension_numbers<[1], [0], [0], [1], [0, 0, 1, 1], [], []>} : vector<8x16xbf16>, vector<16x32xbf16>, vector<8x32xf32> -> vector<8x32xf32>
    %63 = arith.addf %31, %62 : vector<8x32xf32>
    %c0_38 = arith.constant 0 : index
    %c1 = arith.constant 1 : index
    %c0_39 = arith.constant 0 : index
    %c0_40 = arith.constant 0 : index
    %64 = vector.load %arg5[%c0_38, %c1, %c0_39, %c0_40] : memref<1x4x32x16xbf16, #tpu.memory_space<vmem>>, vector<1x1x32x16xbf16>
    %65 = vector.shape_cast %64 : vector<1x1x32x16xbf16> to vector<32x16xbf16>
    %cst_41 = arith.constant dense<0.000000e+00> : vector<8x16xf32>
    %66 = tpu.matmul %30, %65, %cst_41 {dimension_numbers = #tpu.dot_dimension_numbers<[1], [0], [0], [1], [0, 0, 1, 1], [], []>} : vector<8x32xbf16>, vector<32x16xbf16>, vector<8x16xf32> -> vector<8x16xf32>
    %c0_42 = arith.constant 0 : index
    %c1_43 = arith.constant 1 : index
    %c0_44 = arith.constant 0 : index
    %c0_45 = arith.constant 0 : index
    %67 = vector.load %arg6[%c0_42, %c1_43, %c0_44, %c0_45] : memref<1x4x32x16xbf16, #tpu.memory_space<vmem>>, vector<1x1x32x16xbf16>
    %68 = vector.shape_cast %67 : vector<1x1x32x16xbf16> to vector<32x16xbf16>
    %cst_46 = arith.constant dense<0.000000e+00> : vector<8x16xf32>
    %69 = tpu.matmul %30, %68, %cst_46 {dimension_numbers = #tpu.dot_dimension_numbers<[1], [0], [0], [1], [0, 0, 1, 1], [], []>} : vector<8x32xbf16>, vector<32x16xbf16>, vector<8x16xf32> -> vector<8x16xf32>
    %c0_47 = arith.constant 0 : index
    %c1_48 = arith.constant 1 : index
    %c0_49 = arith.constant 0 : index
    %c0_50 = arith.constant 0 : index
    %70 = vector.load %arg7[%c0_47, %c1_48, %c0_49, %c0_50] : memref<1x4x32x16xbf16, #tpu.memory_space<vmem>>, vector<1x1x32x16xbf16>
    %71 = vector.shape_cast %70 : vector<1x1x32x16xbf16> to vector<32x16xbf16>
    %cst_51 = arith.constant dense<0.000000e+00> : vector<8x16xf32>
    %72 = tpu.matmul %30, %71, %cst_51 {dimension_numbers = #tpu.dot_dimension_numbers<[1], [0], [0], [1], [0, 0, 1, 1], [], []>} : vector<8x32xbf16>, vector<32x16xbf16>, vector<8x16xf32> -> vector<8x16xf32>
    %73 = arith.truncf %66 : vector<8x16xf32> to vector<8x16xbf16>
    %74 = arith.truncf %69 : vector<8x16xf32> to vector<8x16xbf16>
    %cst_52 = arith.constant dense<0.000000e+00> : vector<8x8xf32>
    %75 = tpu.matmul %73, %74, %cst_52 {dimension_numbers = #tpu.dot_dimension_numbers<[1], [1], [0], [0], [0, 0, 1, 0], [], []>} : vector<8x16xbf16>, vector<8x16xbf16>, vector<8x8xf32> -> vector<8x8xf32>
    %cst_53 = arith.constant 2.500000e-01 : f32
    %76 = vector.broadcast %cst_53 : f32 to vector<8x8xf32>
    %77 = arith.mulf %75, %76 : vector<8x8xf32>
    %cst_54 = arith.constant dense<0xFF800000> : vector<8xf32>
    %78 = vector.multi_reduction <maximumf>, %77, %cst_54 [1] : vector<8x8xf32> to vector<8xf32>
    %79 = vector.shape_cast %78 : vector<8xf32> to vector<8x1xf32>
    %80 = vector.broadcast %79 : vector<8x1xf32> to vector<8x8xf32>
    %81 = arith.subf %77, %80 : vector<8x8xf32>
    %82 = math.exp %81 : vector<8x8xf32>
    %cst_55 = arith.constant dense<0.000000e+00> : vector<8xf32>
    %83 = vector.multi_reduction <add>, %82, %cst_55 [1] : vector<8x8xf32> to vector<8xf32>
    %84 = vector.shape_cast %83 : vector<8xf32> to vector<8x1xf32>
    %85 = tpu.reciprocal %84 {approx = true} : vector<8x1xf32> -> vector<8x1xf32>
    %86 = vector.broadcast %85 : vector<8x1xf32> to vector<8x8xf32>
    %87 = arith.mulf %82, %86 : vector<8x8xf32>
    %88 = arith.truncf %87 : vector<8x8xf32> to vector<8x8xbf16>
    %89 = arith.truncf %72 : vector<8x16xf32> to vector<8x16xbf16>
    %cst_56 = arith.constant dense<0.000000e+00> : vector<8x16xf32>
    %90 = tpu.matmul %88, %89, %cst_56 {dimension_numbers = #tpu.dot_dimension_numbers<[1], [0], [0], [1], [0, 0, 1, 1], [], []>} : vector<8x8xbf16>, vector<8x16xbf16>, vector<8x16xf32> -> vector<8x16xf32>
    %91 = arith.truncf %90 : vector<8x16xf32> to vector<8x16xbf16>
    %c0_57 = arith.constant 0 : index
    %c1_58 = arith.constant 1 : index
    %c0_59 = arith.constant 0 : index
    %c0_60 = arith.constant 0 : index
    %92 = vector.load %arg8[%c0_57, %c1_58, %c0_59, %c0_60] : memref<1x4x16x32xbf16, #tpu.memory_space<vmem>>, vector<1x1x16x32xbf16>
    %93 = vector.shape_cast %92 : vector<1x1x16x32xbf16> to vector<16x32xbf16>
    %cst_61 = arith.constant dense<0.000000e+00> : vector<8x32xf32>
    %94 = tpu.matmul %91, %93, %cst_61 {dimension_numbers = #tpu.dot_dimension_numbers<[1], [0], [0], [1], [0, 0, 1, 1], [], []>} : vector<8x16xbf16>, vector<16x32xbf16>, vector<8x32xf32> -> vector<8x32xf32>
    %95 = arith.addf %63, %94 : vector<8x32xf32>
    %c0_62 = arith.constant 0 : index
    %c2 = arith.constant 2 : index
    %c0_63 = arith.constant 0 : index
    %c0_64 = arith.constant 0 : index
    %96 = vector.load %arg5[%c0_62, %c2, %c0_63, %c0_64] : memref<1x4x32x16xbf16, #tpu.memory_space<vmem>>, vector<1x1x32x16xbf16>
    %97 = vector.shape_cast %96 : vector<1x1x32x16xbf16> to vector<32x16xbf16>
    %cst_65 = arith.constant dense<0.000000e+00> : vector<8x16xf32>
    %98 = tpu.matmul %30, %97, %cst_65 {dimension_numbers = #tpu.dot_dimension_numbers<[1], [0], [0], [1], [0, 0, 1, 1], [], []>} : vector<8x32xbf16>, vector<32x16xbf16>, vector<8x16xf32> -> vector<8x16xf32>
    %c0_66 = arith.constant 0 : index
    %c2_67 = arith.constant 2 : index
    %c0_68 = arith.constant 0 : index
    %c0_69 = arith.constant 0 : index
    %99 = vector.load %arg6[%c0_66, %c2_67, %c0_68, %c0_69] : memref<1x4x32x16xbf16, #tpu.memory_space<vmem>>, vector<1x1x32x16xbf16>
    %100 = vector.shape_cast %99 : vector<1x1x32x16xbf16> to vector<32x16xbf16>
    %cst_70 = arith.constant dense<0.000000e+00> : vector<8x16xf32>
    %101 = tpu.matmul %30, %100, %cst_70 {dimension_numbers = #tpu.dot_dimension_numbers<[1], [0], [0], [1], [0, 0, 1, 1], [], []>} : vector<8x32xbf16>, vector<32x16xbf16>, vector<8x16xf32> -> vector<8x16xf32>
    %c0_71 = arith.constant 0 : index
    %c2_72 = arith.constant 2 : index
    %c0_73 = arith.constant 0 : index
    %c0_74 = arith.constant 0 : index
    %102 = vector.load %arg7[%c0_71, %c2_72, %c0_73, %c0_74] : memref<1x4x32x16xbf16, #tpu.memory_space<vmem>>, vector<1x1x32x16xbf16>
    %103 = vector.shape_cast %102 : vector<1x1x32x16xbf16> to vector<32x16xbf16>
    %cst_75 = arith.constant dense<0.000000e+00> : vector<8x16xf32>
    %104 = tpu.matmul %30, %103, %cst_75 {dimension_numbers = #tpu.dot_dimension_numbers<[1], [0], [0], [1], [0, 0, 1, 1], [], []>} : vector<8x32xbf16>, vector<32x16xbf16>, vector<8x16xf32> -> vector<8x16xf32>
    %105 = arith.truncf %98 : vector<8x16xf32> to vector<8x16xbf16>
    %106 = arith.truncf %101 : vector<8x16xf32> to vector<8x16xbf16>
    %cst_76 = arith.constant dense<0.000000e+00> : vector<8x8xf32>
    %107 = tpu.matmul %105, %106, %cst_76 {dimension_numbers = #tpu.dot_dimension_numbers<[1], [1], [0], [0], [0, 0, 1, 0], [], []>} : vector<8x16xbf16>, vector<8x16xbf16>, vector<8x8xf32> -> vector<8x8xf32>
    %cst_77 = arith.constant 2.500000e-01 : f32
    %108 = vector.broadcast %cst_77 : f32 to vector<8x8xf32>
    %109 = arith.mulf %107, %108 : vector<8x8xf32>
    %cst_78 = arith.constant dense<0xFF800000> : vector<8xf32>
    %110 = vector.multi_reduction <maximumf>, %109, %cst_78 [1] : vector<8x8xf32> to vector<8xf32>
    %111 = vector.shape_cast %110 : vector<8xf32> to vector<8x1xf32>
    %112 = vector.broadcast %111 : vector<8x1xf32> to vector<8x8xf32>
    %113 = arith.subf %109, %112 : vector<8x8xf32>
    %114 = math.exp %113 : vector<8x8xf32>
    %cst_79 = arith.constant dense<0.000000e+00> : vector<8xf32>
    %115 = vector.multi_reduction <add>, %114, %cst_79 [1] : vector<8x8xf32> to vector<8xf32>
    %116 = vector.shape_cast %115 : vector<8xf32> to vector<8x1xf32>
    %117 = tpu.reciprocal %116 {approx = true} : vector<8x1xf32> -> vector<8x1xf32>
    %118 = vector.broadcast %117 : vector<8x1xf32> to vector<8x8xf32>
    %119 = arith.mulf %114, %118 : vector<8x8xf32>
    %120 = arith.truncf %119 : vector<8x8xf32> to vector<8x8xbf16>
    %121 = arith.truncf %104 : vector<8x16xf32> to vector<8x16xbf16>
    %cst_80 = arith.constant dense<0.000000e+00> : vector<8x16xf32>
    %122 = tpu.matmul %120, %121, %cst_80 {dimension_numbers = #tpu.dot_dimension_numbers<[1], [0], [0], [1], [0, 0, 1, 1], [], []>} : vector<8x8xbf16>, vector<8x16xbf16>, vector<8x16xf32> -> vector<8x16xf32>
    %123 = arith.truncf %122 : vector<8x16xf32> to vector<8x16xbf16>
    %c0_81 = arith.constant 0 : index
    %c2_82 = arith.constant 2 : index
    %c0_83 = arith.constant 0 : index
    %c0_84 = arith.constant 0 : index
    %124 = vector.load %arg8[%c0_81, %c2_82, %c0_83, %c0_84] : memref<1x4x16x32xbf16, #tpu.memory_space<vmem>>, vector<1x1x16x32xbf16>
    %125 = vector.shape_cast %124 : vector<1x1x16x32xbf16> to vector<16x32xbf16>
    %cst_85 = arith.constant dense<0.000000e+00> : vector<8x32xf32>
    %126 = tpu.matmul %123, %125, %cst_85 {dimension_numbers = #tpu.dot_dimension_numbers<[1], [0], [0], [1], [0, 0, 1, 1], [], []>} : vector<8x16xbf16>, vector<16x32xbf16>, vector<8x32xf32> -> vector<8x32xf32>
    %127 = arith.addf %95, %126 : vector<8x32xf32>
    %c0_86 = arith.constant 0 : index
    %c3 = arith.constant 3 : index
    %c0_87 = arith.constant 0 : index
    %c0_88 = arith.constant 0 : index
    %128 = vector.load %arg5[%c0_86, %c3, %c0_87, %c0_88] : memref<1x4x32x16xbf16, #tpu.memory_space<vmem>>, vector<1x1x32x16xbf16>
    %129 = vector.shape_cast %128 : vector<1x1x32x16xbf16> to vector<32x16xbf16>
    %cst_89 = arith.constant dense<0.000000e+00> : vector<8x16xf32>
    %130 = tpu.matmul %30, %129, %cst_89 {dimension_numbers = #tpu.dot_dimension_numbers<[1], [0], [0], [1], [0, 0, 1, 1], [], []>} : vector<8x32xbf16>, vector<32x16xbf16>, vector<8x16xf32> -> vector<8x16xf32>
    %c0_90 = arith.constant 0 : index
    %c3_91 = arith.constant 3 : index
    %c0_92 = arith.constant 0 : index
    %c0_93 = arith.constant 0 : index
    %131 = vector.load %arg6[%c0_90, %c3_91, %c0_92, %c0_93] : memref<1x4x32x16xbf16, #tpu.memory_space<vmem>>, vector<1x1x32x16xbf16>
    %132 = vector.shape_cast %131 : vector<1x1x32x16xbf16> to vector<32x16xbf16>
    %cst_94 = arith.constant dense<0.000000e+00> : vector<8x16xf32>
    %133 = tpu.matmul %30, %132, %cst_94 {dimension_numbers = #tpu.dot_dimension_numbers<[1], [0], [0], [1], [0, 0, 1, 1], [], []>} : vector<8x32xbf16>, vector<32x16xbf16>, vector<8x16xf32> -> vector<8x16xf32>
    %c0_95 = arith.constant 0 : index
    %c3_96 = arith.constant 3 : index
    %c0_97 = arith.constant 0 : index
    %c0_98 = arith.constant 0 : index
    %134 = vector.load %arg7[%c0_95, %c3_96, %c0_97, %c0_98] : memref<1x4x32x16xbf16, #tpu.memory_space<vmem>>, vector<1x1x32x16xbf16>
    %135 = vector.shape_cast %134 : vector<1x1x32x16xbf16> to vector<32x16xbf16>
    %cst_99 = arith.constant dense<0.000000e+00> : vector<8x16xf32>
    %136 = tpu.matmul %30, %135, %cst_99 {dimension_numbers = #tpu.dot_dimension_numbers<[1], [0], [0], [1], [0, 0, 1, 1], [], []>} : vector<8x32xbf16>, vector<32x16xbf16>, vector<8x16xf32> -> vector<8x16xf32>
    %137 = arith.truncf %130 : vector<8x16xf32> to vector<8x16xbf16>
    %138 = arith.truncf %133 : vector<8x16xf32> to vector<8x16xbf16>
    %cst_100 = arith.constant dense<0.000000e+00> : vector<8x8xf32>
    %139 = tpu.matmul %137, %138, %cst_100 {dimension_numbers = #tpu.dot_dimension_numbers<[1], [1], [0], [0], [0, 0, 1, 0], [], []>} : vector<8x16xbf16>, vector<8x16xbf16>, vector<8x8xf32> -> vector<8x8xf32>
    %cst_101 = arith.constant 2.500000e-01 : f32
    %140 = vector.broadcast %cst_101 : f32 to vector<8x8xf32>
    %141 = arith.mulf %139, %140 : vector<8x8xf32>
    %cst_102 = arith.constant dense<0xFF800000> : vector<8xf32>
    %142 = vector.multi_reduction <maximumf>, %141, %cst_102 [1] : vector<8x8xf32> to vector<8xf32>
    %143 = vector.shape_cast %142 : vector<8xf32> to vector<8x1xf32>
    %144 = vector.broadcast %143 : vector<8x1xf32> to vector<8x8xf32>
    %145 = arith.subf %141, %144 : vector<8x8xf32>
    %146 = math.exp %145 : vector<8x8xf32>
    %cst_103 = arith.constant dense<0.000000e+00> : vector<8xf32>
    %147 = vector.multi_reduction <add>, %146, %cst_103 [1] : vector<8x8xf32> to vector<8xf32>
    %148 = vector.shape_cast %147 : vector<8xf32> to vector<8x1xf32>
    %149 = tpu.reciprocal %148 {approx = true} : vector<8x1xf32> -> vector<8x1xf32>
    %150 = vector.broadcast %149 : vector<8x1xf32> to vector<8x8xf32>
    %151 = arith.mulf %146, %150 : vector<8x8xf32>
    %152 = arith.truncf %151 : vector<8x8xf32> to vector<8x8xbf16>
    %153 = arith.truncf %136 : vector<8x16xf32> to vector<8x16xbf16>
    %cst_104 = arith.constant dense<0.000000e+00> : vector<8x16xf32>
    %154 = tpu.matmul %152, %153, %cst_104 {dimension_numbers = #tpu.dot_dimension_numbers<[1], [0], [0], [1], [0, 0, 1, 1], [], []>} : vector<8x8xbf16>, vector<8x16xbf16>, vector<8x16xf32> -> vector<8x16xf32>
    %155 = arith.truncf %154 : vector<8x16xf32> to vector<8x16xbf16>
    %c0_105 = arith.constant 0 : index
    %c3_106 = arith.constant 3 : index
    %c0_107 = arith.constant 0 : index
    %c0_108 = arith.constant 0 : index
    %156 = vector.load %arg8[%c0_105, %c3_106, %c0_107, %c0_108] : memref<1x4x16x32xbf16, #tpu.memory_space<vmem>>, vector<1x1x16x32xbf16>
    %157 = vector.shape_cast %156 : vector<1x1x16x32xbf16> to vector<16x32xbf16>
    %cst_109 = arith.constant dense<0.000000e+00> : vector<8x32xf32>
    %158 = tpu.matmul %155, %157, %cst_109 {dimension_numbers = #tpu.dot_dimension_numbers<[1], [0], [0], [1], [0, 0, 1, 1], [], []>} : vector<8x16xbf16>, vector<16x32xbf16>, vector<8x32xf32> -> vector<8x32xf32>
    %159 = arith.addf %127, %158 : vector<8x32xf32>
    %160 = arith.addf %3, %159 : vector<8x32xf32>
    %c0_110 = arith.constant 0 : index
    %c0_111 = arith.constant 0 : index
    %c0_112 = arith.constant 0 : index
    %161 = vector.load %arg9[%c0_110, %c0_111, %c0_112] : memref<1x1x32xf32, #tpu.memory_space<vmem>>, vector<1x1x32xf32>
    %162 = vector.shape_cast %161 : vector<1x1x32xf32> to vector<1x32xf32>
    %163 = vector.broadcast %162 : vector<1x32xf32> to vector<8x32xf32>
    %164 = arith.addf %160, %163 : vector<8x32xf32>
    %c0_113 = arith.constant 0 : index
    %c0_114 = arith.constant 0 : index
    %c0_115 = arith.constant 0 : index
    %165 = vector.load %arg10[%c0_113, %c0_114, %c0_115] : memref<1x1x32xf32, #tpu.memory_space<vmem>>, vector<1x1x32xf32>
    %166 = vector.shape_cast %165 : vector<1x1x32xf32> to vector<1x32xf32>
    %c0_116 = arith.constant 0 : index
    %c0_117 = arith.constant 0 : index
    %c0_118 = arith.constant 0 : index
    %167 = vector.load %arg11[%c0_116, %c0_117, %c0_118] : memref<1x1x32xf32, #tpu.memory_space<vmem>>, vector<1x1x32xf32>
    %168 = vector.shape_cast %167 : vector<1x1x32xf32> to vector<1x32xf32>
    %cst_119 = arith.constant dense<0.000000e+00> : vector<8xf32>
    %169 = vector.multi_reduction <add>, %164, %cst_119 [1] : vector<8x32xf32> to vector<8xf32>
    %170 = vector.shape_cast %169 : vector<8xf32> to vector<8x1xf32>
    %cst_120 = arith.constant 3.200000e+01 : f32
    %171 = vector.broadcast %cst_120 : f32 to vector<8x1xf32>
    %172 = arith.divf %170, %171 : vector<8x1xf32>
    %173 = vector.broadcast %172 : vector<8x1xf32> to vector<8x32xf32>
    %174 = arith.subf %164, %173 : vector<8x32xf32>
    %175 = arith.mulf %174, %174 : vector<8x32xf32>
    %cst_121 = arith.constant dense<0.000000e+00> : vector<8xf32>
    %176 = vector.multi_reduction <add>, %175, %cst_121 [1] : vector<8x32xf32> to vector<8xf32>
    %177 = vector.shape_cast %176 : vector<8xf32> to vector<8x1xf32>
    %cst_122 = arith.constant 3.200000e+01 : f32
    %178 = vector.broadcast %cst_122 : f32 to vector<8x1xf32>
    %179 = arith.divf %177, %178 : vector<8x1xf32>
    %180 = vector.broadcast %172 : vector<8x1xf32> to vector<8x32xf32>
    %181 = arith.subf %164, %180 : vector<8x32xf32>
    %cst_123 = arith.constant 9.99999974E-6 : f32
    %182 = vector.broadcast %cst_123 : f32 to vector<8x1xf32>
    %183 = arith.addf %179, %182 : vector<8x1xf32>
    %184 = math.rsqrt %183 : vector<8x1xf32>
    %185 = vector.broadcast %184 : vector<8x1xf32> to vector<8x32xf32>
    %186 = arith.mulf %181, %185 : vector<8x32xf32>
    %187 = vector.broadcast %166 : vector<1x32xf32> to vector<8x32xf32>
    %188 = arith.mulf %186, %187 : vector<8x32xf32>
    %189 = vector.broadcast %168 : vector<1x32xf32> to vector<8x32xf32>
    %190 = arith.addf %188, %189 : vector<8x32xf32>
    %191 = arith.truncf %190 : vector<8x32xf32> to vector<8x32xbf16>
    %c0_124 = arith.constant 0 : index
    %c0_125 = arith.constant 0 : index
    %c0_126 = arith.constant 0 : index
    %192 = vector.load %arg12[%c0_124, %c0_125, %c0_126] : memref<1x32x64xbf16, #tpu.memory_space<vmem>>, vector<1x32x64xbf16>
    %193 = vector.shape_cast %192 : vector<1x32x64xbf16> to vector<32x64xbf16>
    %cst_127 = arith.constant dense<0.000000e+00> : vector<8x64xf32>
    %194 = tpu.matmul %191, %193, %cst_127 {dimension_numbers = #tpu.dot_dimension_numbers<[1], [0], [0], [1], [0, 0, 1, 1], [], []>} : vector<8x32xbf16>, vector<32x64xbf16>, vector<8x64xf32> -> vector<8x64xf32>
    %c0_128 = arith.constant 0 : index
    %c0_129 = arith.constant 0 : index
    %c0_130 = arith.constant 0 : index
    %195 = vector.load %arg13[%c0_128, %c0_129, %c0_130] : memref<1x1x64xf32, #tpu.memory_space<vmem>>, vector<1x1x64xf32>
    %196 = vector.shape_cast %195 : vector<1x1x64xf32> to vector<1x64xf32>
    %197 = vector.broadcast %196 : vector<1x64xf32> to vector<8x64xf32>
    %198 = arith.addf %194, %197 : vector<8x64xf32>
    %cst_131 = arith.constant 5.000000e-01 : f32
    %199 = vector.broadcast %cst_131 : f32 to vector<8x64xf32>
    %200 = arith.mulf %199, %198 : vector<8x64xf32>
    %cst_132 = arith.constant 4.471500e-02 : f32
    %201 = vector.broadcast %cst_132 : f32 to vector<8x64xf32>
    %202 = arith.mulf %201, %198 : vector<8x64xf32>
    %203 = arith.mulf %202, %198 : vector<8x64xf32>
    %204 = arith.mulf %203, %198 : vector<8x64xf32>
    %205 = arith.addf %198, %204 : vector<8x64xf32>
    %cst_133 = arith.constant 0.797884583 : f32
    %206 = vector.broadcast %cst_133 : f32 to vector<8x64xf32>
    %207 = arith.mulf %206, %205 : vector<8x64xf32>
    %208 = math.tanh %207 : vector<8x64xf32>
    %cst_134 = arith.constant 1.000000e+00 : f32
    %209 = vector.broadcast %cst_134 : f32 to vector<8x64xf32>
    %210 = arith.addf %209, %208 : vector<8x64xf32>
    %211 = arith.mulf %200, %210 : vector<8x64xf32>
    %212 = arith.truncf %211 : vector<8x64xf32> to vector<8x64xbf16>
    %c0_135 = arith.constant 0 : index
    %c0_136 = arith.constant 0 : index
    %c0_137 = arith.constant 0 : index
    %213 = vector.load %arg14[%c0_135, %c0_136, %c0_137] : memref<1x64x32xbf16, #tpu.memory_space<vmem>>, vector<1x64x32xbf16>
    %214 = vector.shape_cast %213 : vector<1x64x32xbf16> to vector<64x32xbf16>
    %cst_138 = arith.constant dense<0.000000e+00> : vector<8x32xf32>
    %215 = tpu.matmul %212, %214, %cst_138 {dimension_numbers = #tpu.dot_dimension_numbers<[1], [0], [0], [1], [0, 0, 1, 1], [], []>} : vector<8x64xbf16>, vector<64x32xbf16>, vector<8x32xf32> -> vector<8x32xf32>
    %c0_139 = arith.constant 0 : index
    %c0_140 = arith.constant 0 : index
    %c0_141 = arith.constant 0 : index
    %216 = vector.load %arg15[%c0_139, %c0_140, %c0_141] : memref<1x1x32xf32, #tpu.memory_space<vmem>>, vector<1x1x32xf32>
    %217 = vector.shape_cast %216 : vector<1x1x32xf32> to vector<1x32xf32>
    %218 = vector.broadcast %217 : vector<1x32xf32> to vector<8x32xf32>
    %219 = arith.addf %215, %218 : vector<8x32xf32>
    %220 = arith.addf %164, %219 : vector<8x32xf32>
    %c0_142 = arith.constant 0 : index
    %c0_143 = arith.constant 0 : index
    %221 = vector.load %arg17[%c0_142, %c0_143] : memref<8x32xf32, #tpu.memory_space<vmem>>, vector<8x32xf32>
    tpu.vector_store %arg17[%c0_142, %c0_143], %220 {strides = array<i32>} : memref<8x32xf32, #tpu.memory_space<vmem>>, vector<8x32xf32>,
    %c1_i32 = arith.constant 1 : i32
    %222 = arith.cmpi eq, %arg1, %c1_i32 : i32
    %223 = arith.extui %222 : i1 to i32
    %c0_i32_144 = arith.constant 0 : i32
    %224 = arith.cmpi ne, %223, %c0_i32_144 : i32
    scf.if %224 {
      %c0_145 = arith.constant 0 : index
      %c0_146 = arith.constant 0 : index
      %c0_147 = arith.constant 0 : index
      %225 = vector.load %arg16[%c0_145, %c0_146, %c0_147] : memref<1x8x32xf32, #tpu.memory_space<vmem>>, vector<1x8x32xf32>
      %226 = vector.shape_cast %225 : vector<1x8x32xf32> to vector<8x32xf32>
      %227 = vector.shape_cast %220 : vector<8x32xf32> to vector<1x8x32xf32>
      tpu.vector_store %arg16[%c0_145, %c0_146, %c0_147], %227 {strides = array<i32>} : memref<1x8x32xf32, #tpu.memory_space<vmem>>, vector<1x8x32xf32>,
    } else {
    }
    return
  }
  func.func @transform_0(%arg0: i32, %arg1: i32) -> (i32, i32, i32) {
    %c0_i32 = arith.constant 0 : i32
    %c0_i32_0 = arith.constant 0 : i32
    %c0_i32_1 = arith.constant 0 : i32
    return %arg0, %c0_i32, %c0_i32_0 : i32, i32, i32
  }
  func.func @transform_1(%arg0: i32, %arg1: i32) -> (i32, i32, i32) {
    %c0_i32 = arith.constant 0 : i32
    %c0_i32_0 = arith.constant 0 : i32
    %c0_i32_1 = arith.constant 0 : i32
    return %arg1, %c0_i32, %c0_i32_0 : i32, i32, i32
  }
  func.func @transform_2(%arg0: i32, %arg1: i32) -> (i32, i32, i32) {
    %c0_i32 = arith.constant 0 : i32
    %c0_i32_0 = arith.constant 0 : i32
    %c0_i32_1 = arith.constant 0 : i32
    return %arg1, %c0_i32, %c0_i32_0 : i32, i32, i32
  }
  func.func @transform_3(%arg0: i32, %arg1: i32) -> (i32, i32, i32, i32) {
    %c0_i32 = arith.constant 0 : i32
    %c0_i32_0 = arith.constant 0 : i32
    %c0_i32_1 = arith.constant 0 : i32
    %c0_i32_2 = arith.constant 0 : i32
    return %arg1, %c0_i32, %c0_i32_0, %c0_i32_1 : i32, i32, i32, i32
  }
  func.func @transform_4(%arg0: i32, %arg1: i32) -> (i32, i32, i32, i32) {
    %c0_i32 = arith.constant 0 : i32
    %c0_i32_0 = arith.constant 0 : i32
    %c0_i32_1 = arith.constant 0 : i32
    %c0_i32_2 = arith.constant 0 : i32
    return %arg1, %c0_i32, %c0_i32_0, %c0_i32_1 : i32, i32, i32, i32
  }
  func.func @transform_5(%arg0: i32, %arg1: i32) -> (i32, i32, i32, i32) {
    %c0_i32 = arith.constant 0 : i32
    %c0_i32_0 = arith.constant 0 : i32
    %c0_i32_1 = arith.constant 0 : i32
    %c0_i32_2 = arith.constant 0 : i32
    return %arg1, %c0_i32, %c0_i32_0, %c0_i32_1 : i32, i32, i32, i32
  }
  func.func @transform_6(%arg0: i32, %arg1: i32) -> (i32, i32, i32, i32) {
    %c0_i32 = arith.constant 0 : i32
    %c0_i32_0 = arith.constant 0 : i32
    %c0_i32_1 = arith.constant 0 : i32
    %c0_i32_2 = arith.constant 0 : i32
    return %arg1, %c0_i32, %c0_i32_0, %c0_i32_1 : i32, i32, i32, i32
  }
  func.func @transform_7(%arg0: i32, %arg1: i32) -> (i32, i32, i32) {
    %c0_i32 = arith.constant 0 : i32
    %c0_i32_0 = arith.constant 0 : i32
    %c0_i32_1 = arith.constant 0 : i32
    return %arg1, %c0_i32, %c0_i32_0 : i32, i32, i32
  }
  func.func @transform_8(%arg0: i32, %arg1: i32) -> (i32, i32, i32) {
    %c0_i32 = arith.constant 0 : i32
    %c0_i32_0 = arith.constant 0 : i32
    %c0_i32_1 = arith.constant 0 : i32
    return %arg1, %c0_i32, %c0_i32_0 : i32, i32, i32
  }
  func.func @transform_9(%arg0: i32, %arg1: i32) -> (i32, i32, i32) {
    %c0_i32 = arith.constant 0 : i32
    %c0_i32_0 = arith.constant 0 : i32
    %c0_i32_1 = arith.constant 0 : i32
    return %arg1, %c0_i32, %c0_i32_0 : i32, i32, i32
  }
  func.func @transform_10(%arg0: i32, %arg1: i32) -> (i32, i32, i32) {
    %c0_i32 = arith.constant 0 : i32
    %c0_i32_0 = arith.constant 0 : i32
    %c0_i32_1 = arith.constant 0 : i32
    return %arg1, %c0_i32, %c0_i32_0 : i32, i32, i32
  }
  func.func @transform_11(%arg0: i32, %arg1: i32) -> (i32, i32, i32) {
    %c0_i32 = arith.constant 0 : i32
    %c0_i32_0 = arith.constant 0 : i32
    %c0_i32_1 = arith.constant 0 : i32
    return %arg1, %c0_i32, %c0_i32_0 : i32, i32, i32
  }
  func.func @transform_12(%arg0: i32, %arg1: i32) -> (i32, i32, i32) {
    %c0_i32 = arith.constant 0 : i32
    %c0_i32_0 = arith.constant 0 : i32
    %c0_i32_1 = arith.constant 0 : i32
    return %arg1, %c0_i32, %c0_i32_0 : i32, i32, i32
  }
  func.func @transform_13(%arg0: i32, %arg1: i32) -> (i32, i32, i32) {
    %c0_i32 = arith.constant 0 : i32
    %c0_i32_0 = arith.constant 0 : i32
    %c0_i32_1 = arith.constant 0 : i32
    return %arg1, %c0_i32, %c0_i32_0 : i32, i32, i32
  }
  func.func @transform_14(%arg0: i32, %arg1: i32) -> (i32, i32, i32) {
    %c0_i32 = arith.constant 0 : i32
    %c0_i32_0 = arith.constant 0 : i32
    %c0_i32_1 = arith.constant 0 : i32
    return %arg0, %c0_i32, %c0_i32_0 : i32, i32, i32
  }
}

</mosaic_0001>

<bundles_post_ra>
// kernel: transformer_forward.1
= control target key start
LH: loop header
LB: loop body
LE: loop exit
PB: predicated region body
PF: predicated region fallthrough
CT: control target
= control target key end

     0   :  { %s3718_s0 = inlined_call_operand.hbm [shape: f32[2,8,32], index: 0, kind: input, shape index: {}, may-alias: {0,14}]   ;;  %s3719_s1 = inlined_call_operand.vmem [shape: f32[2,1,32], index: 1, kind: input, shape index: {}]   ;;  %s3720_s2 = inlined_call_operand.vmem [shape: f32[2,1,32], index: 2, kind: input, shape index: {}]   ;;  %s3721_s3 = inlined_call_operand.vmem [shape: bf16[2,4,32,16], index: 3, kind: input, shape index: {}]   ;;  %s3722_s4 = inlined_call_operand.vmem [shape: bf16[2,4,32,16], index: 4, kind: input, shape index: {}]   ;;  %s3723_s5 = inlined_call_operand.vmem [shape: bf16[2,4,32,16], index: 5, kind: input, shape index: {}]   ;;  %s3724_s6 = inlined_call_operand.vmem [shape: bf16[2,4,16,32], index: 6, kind: input, shape index: {}]   ;;  %s3725_s7 = inlined_call_operand.vmem [shape: f32[2,1,32], index: 7, kind: input, shape index: {}]   ;;  %s3726_s8 = inlined_call_operand.vmem [shape: f32[2,1,32], index: 8, kind: input, shape index: {}]   ;;  %s3727_s9 = inlined_call_operand.vmem [shape: f32[2,1,32], index: 9, kind: input, shape index: {}]   ;;  %s3728_s10 = inlined_call_operand.vmem [shape: bf16[2,32,64], index: 10, kind: input, shape index: {}]   ;;  %s3729_s11 = inlined_call_operand.vmem [shape: f32[2,1,64], index: 11, kind: input, shape index: {}]   ;;  %s3730_s12 = inlined_call_operand.vmem [shape: bf16[2,64,32], index: 12, kind: input, shape index: {}]   ;;  %s3731_s13 = inlined_call_operand.vmem [shape: f32[2,1,32], index: 13, kind: input, shape index: {}]   ;;  %s3732_s14 = inlined_call_operand.hbm [shape: f32[2,8,32], index: 14, kind: output, shape index: {}, may-alias: {0,14}]  }
   0x1   :  { %3747 = sst [smem:[#allocation23_spill]] %s3718_s0 }
   0x2   :  { %3748 = sst [smem:[#allocation24_spill]] %s3721_s3 }
   0x3   :  { %3749 = sst [smem:[#allocation25_spill]] %s3722_s4 }
   0x4   :  { %3750 = sst [smem:[#allocation26_spill]] %s3723_s5 }
   0x5   :  { %3751 = sst [smem:[#allocation27_spill]] %s3724_s6 }
   0x6   :  { %3752 = sst [smem:[#allocation28_spill]] %s3725_s7 }
   0x7   :  { %3753 = sst [smem:[#allocation29_spill]] %s3728_s10 }
   0x8   :  { %3754 = sst [smem:[#allocation30_spill]] %s3729_s11 }
   0x9   :  { %3755 = sst [smem:[#allocation31_spill]] %s3730_s12 }
   0xa   :  { %3756 = sst [smem:[#allocation32_spill]] %s3731_s13 }
   0xb   :  { %3757 = sst [smem:[#allocation33_spill]] %s3732_s14 }
   0xc   :  { %19 = vsyncpa [#allocation4], 0 }
   0xd   :  { %21 = vsyncpa [#allocation4 + $0x1], 0 }
   0xe   :  { %22 = vsyncpa [#allocation5], 0 }
   0xf   :  { %24 = vsyncpa [#allocation5 + $0x1], 0  ;;  %s3260_s29 = smov 0   ;;  %s3262_s30 = smov 0  }
  0x10   :  { %s3264_s15 = smov 0   ;;  %s3266_s16 = smov 0  }
  0x11   :  { %s3268_s17 = smov 0   ;;  %s3270_s18 = smov 0  }
  0x12   :  { %s3272_s19 = smov 0   ;;  %s3274_s20 = smov 0  }
  0x13 LB: > { %3758 = sst [smem:[#allocation9_spill]] %s3151_s29  ;;  %s2521_s21 = sadd.s32 4294967295, %s3179_s20   ;;  %s3179_s20 = sphi %s3274_s20, %s30_s20   ;;  %s3175_s19 = sphi %s3272_s19, %s3809_s19   ;;  %s3171_s18 = sphi %s3270_s18, %s3808_s18   ;;  %s3167_s17 = sphi %s3268_s17, %s3807_s17   ;;  %s3163_s16 = sphi %s3266_s16, %s3806_s16   ;;  %s3159_s15 = sphi %s3264_s15, %s3805_s15   ;;  %s3155_s30 = sphi %s3262_s30, %s3804_s30   ;;  %s3151_s29 = sphi %s3260_s29, %s3803_s29  }
  0x14   : > { %3759 = sst [smem:[#allocation10_spill]] %s3155_s30  ;;  %s2522_s22 = sadd.s32 4294967294, %s3179_s20  }
  0x15   : > { %3760 = sst [smem:[#allocation11_spill]] %s3159_s15  ;;  %s39_s23 = sadd.s32 1, %s3171_s18 }
  0x16   : > { %3761 = sst [smem:[#allocation12_spill]] %s3167_s17  ;;  %s42_s24 = sadd.s32 1, %s3175_s19 }
  0x17   : > { %3762 = sst [smem:[#allocation13_spill]] %s3171_s18  ;;  %p40_p0 = scmp.ge.s32.totalorder %s39_s23, 2 }
  0x18   : > { %3763 = sst [smem:[#allocation14_spill]] %s3175_s19  ;;  %s49_s25 = sadd.s32 1, %s3159_s15 }
  0x19   : > { %3764 = sst [smem:[#allocation15_spill]] %s3179_s20  ;;  %p56_p1 = scmp.ne.s32.totalorder %s3159_s15, %s3155_s30 }
  0x1a   : > { %p57_p2 = scmp.eq.s32.totalorder %s3179_s20, 0  ;;  %s3811_s23 = smov (%p40_p0, %s39_s23), 0 }
  0x1b   : > { %3765 = sst [smem:[#allocation16_spill]] %s3811_s23  ;;  %s3813_s24 = smov (!%p40_p0, %s42_s24), %s3175_s19 }
  0x1c   : > { %p3311_p3 = por %p57_p2, %p56_p1  ;;  %p62_p4 = scmp.ne.s32.totalorder %s3155_s30, %s3151_s29 }
  0x1d   : > { %p44_p5 = scmp.ge.s32.totalorder %s3813_s24, 2  ;;  %p63_p6 = scmp.eq.s32.totalorder %s2521_s21, 0 }
  0x1e   : > { %p424_p7 = scmp.eq.s32.totalorder %s2521_s21, 3  ;;  %p430_p8 = scmp.eq.s32.totalorder %s2522_s22, 3 }
  0x1f   : > { %s3815_s24 = smov (%p44_p5, %s3813_s24), 0  ;;  %p3319_p9 = por %p63_p6, %p62_p4 }
  0x20   : > { %3767 = sst [smem:[#allocation17_spill]] %s3815_s24  ;;  %p3323_p10 = por %p424_p7, %p56_p1 }
  0x21   : > { %s46_s23 = ssub.s32 %s3175_s19, %s3815_s24  ;;  %p3329_p11 = por %p430_p8, %p62_p4 }
  0x22   : > { %s3769_s28 = scalar_select %p3323_p10, 1, 0 }
  0x23   : > { %s3771_s18 = scalar_select %p3329_p11, 1, 0 }
  0x24   : > { %3770 = sst [smem:[#allocation18_spill]] %s3769_s28  ;;  %p47_p12 = scmp.eq.s32.totalorder %s46_s23, 0 }
  0x25   : > { %3772 = sst [smem:[#allocation19_spill]] %s3771_s18  ;;  %p2931_p13 = scmp.lt.s32.totalorder %s3179_s20, 4 }
  0x26   : > { %s450_s21 = sand.u32 1, %s3159_s15   ;;  %s2526_s14 = sshll.u32 %s3175_s19, 7 }
  0x27   : > { %s3336_s22 = scalar_select %p47_p12, %s3159_s15, %s49_s25  }
  0x28   : > { %s2525_s29 = sshll.u32 %s450_s21, 3  ;;  %s3774_s0 = sld [smem:[#allocation23_spill]] }
  0x29   : > { %3773 = sst [smem:[#allocation20_spill]] %s3336_s22  ;;  %s454_s11 = scalar_lea.vmem [#allocation3], %s2525_s29 }
  0x2a   : > { %s461_s10 = sshll.u32 %s454_s11, 4  ;;  %p3344_p0 = pnand %p2931_p13, %p3311_p3  ;;  %s462_s10 = int_to_ptr.vmem [resolvable:$true] %s461_s10 }
  0x2b   : > { %p2527_p1 = scmp.ge.s32.totalorder %s3179_s20, 1  ;;  %p556_p2 = scmp.lt.s32.totalorder %s3179_s20, 5 }
  0x2c   : > { %s451_s23 = scalar_lea.sflag [#allocation4], %s450_s21  ;;  %p3057_p4 = pneg %p3344_p0 }
  0x2d   : > { %s3068_s25 = scalar_lea.vmem %s462_s10, 128  ;;  %s3181_s13 = smov [#allocation3]  }
  0x2e   : > { %s459_s12 = scalar_lea.hbm %s3774_s0, %s2526_s14  ;;  %p3069_p5 = scmp.ne.s32.totalorder %s462_s10, %s3068_s25 }
  0x2f   : > { %s3073_s14 = sshll.u32 %s3181_s13, 4  ;;  %s3074_s14 = int_to_ptr.vmem [resolvable:$false] %s3073_s14 }
  0x30   : > { %p3071_p6 = pnand %p3069_p5, %p3057_p4  ;;  %s3075_s11 = scalar_lea.vmem %s3074_s14, 256 }
  0x31   : > { %p3076_p8 = scmp.lt.s32.totalorder %s462_s10, %s3074_s14  ;;  %p3077_p12 = scmp.lt.s32.totalorder %s3075_s11, %s3068_s25 }
  0x32   : > { %p3072_p7 = pneg %p3071_p6 }
  0x33   : > { %p3078_p3 = por %p3077_p12, %p3076_p8 }
  0x35   : > { %p3079_p13 = pnand %p3078_p3, %p3072_p7 }
  0x37   : > { %3082 = shalt.err (!%p3079_p13)
}
  0x38   : > { %2926 = dma.hbm_to_vmem [thread:$0]  (!%p3344_p0), %s459_s12, 128, %s462_s10, %s451_s23  }
  0x39   : > { %p557_p11 = pnand %p2527_p1, %p556_p2 }
  0x3b   : > { %560 = sbr.rel (%p557_p11) target bundleno = 4813 (0x12cd), region = 76 }
  0x40   : > { %s3359_s29 = sand.u32 1, %s3155_s30  }
  0x41   : > { %3776 = sst [smem:[#allocation21_spill]] %s3359_s29  ;;  %s2528_s17 = sshll.u32 %s3359_s29, 3 }
  0x42   : > { %s563_s26 = scalar_lea.sflag [#allocation4], %s3359_s29  ;;  %s566_s21 = scalar_lea.vmem [#allocation3], %s2528_s17 }
  0x43   : > { %3142 = dma.done.wait (%p3319_p9), %s563_s26, 128  }
  0x44   : > { %3144 = vsyncadd (%p3319_p9), %s563_s26, 4294967168  ;;  %p662_p0 = scmp.lt.s32.totalorder %s3163_s16, 1  ;;  %s3777_s3 = sld [smem:[#allocation24_spill]] }
  0x45   : > { %s3778_s4 = sld [smem:[#allocation25_spill]]  ;;  %s3432_s24 = scalar_lea.vmem [#allocation6], %s2528_s17 }
  0x46   : > { %s3369_s10 = scalar_select %p662_p0, %s3163_s16, 1 }
  0x47   : > { %s3779_s5 = sld [smem:[#allocation26_spill]]  ;;  %p2542_p9 = scmp.ne.s32.totalorder %s3163_s16, 0 }
  0x48   : > { %s2657_s14 = sshll.u32 %s3369_s10, 6  ;;  %s2660_s11 = sshll.u32 %s3369_s10, 5 }
  0x49   : > { %s3780_s6 = sld [smem:[#allocation27_spill]]  ;;  %s696_s28 = scalar_lea.vmem %s3727_s9, %s3369_s10 }
  0x4a   : > { %s3384_s12 = scalar_lea.vmem %s3777_s3, %s2657_s14  ;;  %s2661_s30 = sshll.u32 %s3369_s10, 4 }
  0x4b   : > { %s3389_s22 = scalar_lea.vmem %s3778_s4, %s2657_s14  ;;  %s3785_s0 = sld [smem:[#allocation31_spill]] }
  0x4c   : > { %s3786_s19 = sld [smem:[#allocation32_spill]] }
  0x4d   : > { %s3394_s27 = scalar_lea.vmem %s3779_s5, %s2657_s14  ;;  %s3783_s5 = sld [smem:[#allocation29_spill]] }
  0x4f   : > { %s3399_s25 = scalar_lea.vmem %s3780_s6, %s2660_s11  ;;  %s3784_s6 = sld [smem:[#allocation30_spill]] }
  0x50   : > { %3781 = sst [smem:[#allocation22_spill]] %s3399_s25 }
  0x51   : > { %s3426_s7 = scalar_lea.vmem %s3785_s0, %s2660_s11  ;;  %717 = sbr.rel (%p2542_p9) target bundleno = 88 (0x58), region = 84 }
  0x52   : > { %s712_s4 = scalar_lea.vmem %s3786_s19, %s3369_s10 }
  0x53   : > { %s3417_s29 = scalar_lea.vmem %s3783_s5, %s2661_s30 }
  0x55   : > { %s704_s25 = scalar_lea.vmem %s3784_s6, %s3369_s10 }
  0x56   : > { %v718_v0 = vld [vmem:[%s566_s21] sm:$0xff]  ;;  %vm719_vm0 = vcmask 261120  }
  0x57   : > { %720 = vst.msk [vmem:[#allocation2] sm:$0xff] %vm719_vm0, %v718_v0 }
  0x58 PF: > { %vm724_vm1 = vcmask 261120   ;;  %v2999_v8 = vld [vmem:[%s3384_s12 + $0x8] sm:$0xff]   ;;  %v3182_v10 = vmov 0.0   ;;  %v3001_v11 = vld [vmem:[%s3384_s12] sm:$0xff]   ;;  %vm3183_vm2 = vmmov 0   ;;  %s3787_s17 = scalar_lea.vmem %s3719_s1, %s3369_s10  ;;  %s3788_s0 = scalar_lea.vmem %s3720_s2, %s3369_s10  ;;  %vm927_vm3 = vcmask 130048  }
  0x59   : > { %v3000_v9 = vld [vmem:[%s3389_s22 + $0x8] sm:$0xff]   ;;  %2731 = vmatprep.subr.bf16.mxu0 %v3182_v10  ;;  %2739 = vmatprep.subr.bf16.mxu1 %v3182_v10  ;;  %v3002_v12 = vld [vmem:[%s3389_s22] sm:$0xff]   ;;  %vm992_vm4 = vcmask 1043456   ;;  %v3005_v36 = vld [vmem:[%s3384_s12 + $0x18] sm:$0xff]   ;;  %vm975_vm5 = vcmask 64512   ;;  %s3789_s19 = sld [smem:[#allocation22_spill]]  ;;  %s3792_s18 = scalar_lea.vmem %s3726_s8, %s3369_s10 }
  0x5a   : > { %2732 = vmatpush3.bf16.msra.mxu0 %v2999_v8  ;;  %2740 = vmatpush3.bf16.msra.mxu1 %v3000_v9  ;;  %v2543_v17 = vld [vmem:[%s3787_s17] ss:$0 sm:$0xff]  ;;  %v3003_v22 = vld [vmem:[%s3394_s27 + $0x8] sm:$0xff]   ;;  %v3006_v42 = vld [vmem:[%s3384_s12 + $0x10] sm:$0xff]   ;;  %vm2240_vm6 = vcmask 523264   ;;  %p2652_p11 = scmp.ne.s32.totalorder %s3163_s16, 1 }
  0x5b   : > { %2733 = vmatprep.subr.bf16.mxu0 %v3182_v10  ;;  %2741 = vmatprep.subr.bf16.mxu1 %v3182_v10  ;;  %v2544_v19 = vld [vmem:[%s3788_s0] ss:$0 sm:$0xff]  ;;  %v3007_v44 = vld [vmem:[%s3394_s27 + $0x18] sm:$0xff]   ;;  %v3008_v45 = vld [vmem:[%s3394_s27 + $0x10] sm:$0xff]  }
  0x5c   : > { %2735 = vmatprep.mubr.msk.bf16.mxu0 %vm3183_vm2, %v3182_v10  ;;  %2743 = vmatprep.mubr.msk.bf16.mxu1 %vm3183_vm2, %v3182_v10  ;;  %v3004_v24 = vld [vmem:[%s3394_s27] sm:$0xff]   ;;  %v3010_v9 = vld [vmem:[%s3389_s22 + $0x10] sm:$0xff]  }
  0x5e   : > { %v3435_v1 = vld [vmem:[#allocation2] sm:$0xff]  ;;  %2734 = vmatpush3.bf16.msra.mxu0 %v3001_v11  ;;  %2742 = vmatpush3.bf16.msra.mxu1 %v3002_v12 }
  0x5f   : > { %v725_v2 = vsel %vm724_vm1, %v3435_v1, 0.0  ;;  %2747 = vmatprep.subr.bf16.mxu0 %v3182_v10  ;;  %2755 = vmatprep.subr.bf16.mxu1 %v3182_v10 }
  0x60   : > { %726 = vadd.xlane.f32.xlu0 %v725_v2 }
  0xe9   : > { %v727_v3 = vpop.xlane.xlu0 %726 }
  0xea   : > { %v729_v4 = vmul.f32 0.03125, %v727_v3 }
  0xec   : > { %v730_v5 = vsub.f32 %v3435_v1, %v729_v4 }
  0xee   : > { %v731_v6 = vmul.f32 %v730_v5, %v730_v5 }
  0xf0   : > { %v732_v7 = vsel %vm724_vm1, %v731_v6, 0.0 }
  0xf1   : > { %733 = vadd.xlane.f32.xlu0 %v732_v7  ;;  %v3009_v7 = vld [vmem:[%s3389_s22 + $0x18] sm:$0xff]  }
 0x17a   : > { %v734_v13 = vpop.xlane.xlu0 %733 }
 0x17b   : > { %v735_v14 = vmul.f32 0.03125, %v734_v13 }
 0x17d   : > { %v736_v15 = vadd.f32 1e-05, %v735_v14 }
 0x17f   : > { %3033 = vrsqrt.f32 %v736_v15 }
 0x18c   : > { %v3034_v16 = vpop.eup %3033 }
 0x18d   : > { %v738_v18 = vmul.f32 %v3034_v16, %v730_v5 }
 0x18f   : > { %v745_v20 = vmul.f32 %v2543_v17, %v738_v18 }
 0x191   : > { %v752_v21 = vadd.f32 %v2544_v19, %v745_v20 }
 0x193   : > { %v3466_v23 = vpack.c.bf16 %v752_v21, %v752_v21 }
 0x195   : > { %2736 = vmatmul.mubr.msk.bf16.vlgmr.msra.gmra.mxu0 %vm724_vm1, %v3466_v23  ;;  %2744 = vmatmul.mubr.msk.bf16.vlgmr.msra.gmra.mxu1 %vm724_vm1, %v3466_v23 }
 0x196   : > { %2748 = vmatpush3.bf16.msra.mxu0 %v3003_v22  ;;  %2751 = vmatprep.mubr.msk.bf16.mxu0 %vm3183_vm2, %v3182_v10 }
 0x197   : > { %2749 = vmatprep.subr.bf16.mxu0 %v3182_v10  ;;  %2757 = vmatprep.mubr.msk.bf16.mxu1 %vm3183_vm2, %v3182_v10 }
 0x19a   : > { %2750 = vmatpush3.bf16.msra.mxu0 %v3004_v24 }
 0x19b   : > { %2761 = vmatprep.subr.bf16.mxu0 %v3182_v10 }
 0x19d   : > { %2752 = vmatmul.mubr.msk.bf16.vlgmr.msra.gmra.mxu0 %vm724_vm1, %v3466_v23 }
 0x19e   : > { %2763 = vmatprep.mubr.msk.bf16.mxu0 %vm3183_vm2, %v3182_v10 }
 0x255   : > { %v807_v25 = vpop.f32.mrf.mxu0  ;;  %v863_v26 = vpop.f32.mrf.mxu1 }
 0x256   : > { %v926_v27 = vpack.c.bf16 %v863_v26, %v863_v26  ;;  %v925_v37 = vpack.c.bf16 %v807_v25, %v807_v25 }
 0x257   : > { %v2737_v28 = vpop.f32.mrf.mxu0  ;;  %v2745_v29 = vpop.f32.mrf.mxu1 }
 0x258   : > { %v932_v30 = vsel %vm927_vm3, %v926_v27, 0 }
 0x259   : > { %v810_v31 = vpop.f32.mrf.mxu0  ;;  %v866_v32 = vpop.f32.mrf.mxu1  ;;  %2756 = vmatpush3.bf16.xpose.msra.mxu1 %v932_v30 }
 0x25a   : > { %2767 = vmatprep.subr.bf16.mxu1 %v3182_v10 }
 0x25b   : > { %v2738_v33 = vpop.f32.mrf.mxu0  ;;  %v2746_v34 = vpop.f32.mrf.mxu1 }
 0x25c   : > { %v3014_v34 = vld [vmem:[%s3789_s19 + $0x8] sm:$0xff]  }
 0x25d   : > { %v919_v35 = vpop.f32.mrf.mxu0 }
 0x25e   : > { %v988_v38 = vpack.c.bf16 %v919_v35, %v919_v35 }
 0x25f   : > { %v2753_v39 = vpop.f32.mrf.mxu0 }
 0x260   : > { %v994_v40 = vsel %vm992_vm4, %v988_v38, 0  ;;  %2758 = vmatmul.mubr.msk.bf16.vlgmr.msra.gmra.mxu1 %vm927_vm3, %v925_v37  ;;  %v3011_v38 = vld [vmem:[%s3789_s19] sm:$0xff]  }
 0x261   : > { %v922_v41 = vpop.f32.mrf.mxu0  ;;  %2762 = vmatpush3.bf16.msra.mxu0 %v994_v40  ;;  %2768 = vmatpush3.bf16.msra.mxu1 %v3005_v36  ;;  %v3012_v40 = vld [vmem:[%s3389_s22 + $0x28] sm:$0xff]  }
 0x262   : > { %2769 = vmatprep.subr.bf16.mxu1 %v3182_v10  ;;  %2771 = vmatprep.mubr.msk.bf16.mxu1 %vm3183_vm2, %v3182_v10 }
 0x263   : > { %v2754_v43 = vpop.f32.mrf.mxu0  ;;  %2775 = vmatprep.subr.bf16.mxu0 %v3182_v10 }
 0x265   : > { %2770 = vmatpush3.bf16.msra.mxu1 %v3006_v42  ;;  %v3013_v42 = vld [vmem:[%s3389_s22 + $0x20] sm:$0xff]  }
 0x266   : > { %2783 = vmatprep.subr.bf16.mxu1 %v3182_v10 }
 0x268   : > { %2772 = vmatmul.mubr.msk.bf16.vlgmr.msra.gmra.mxu1 %vm724_vm1, %v3466_v23 }
 0x269   : > { %2784 = vmatpush3.bf16.msra.mxu1 %v3007_v44  ;;  %2787 = vmatprep.mubr.msk.bf16.mxu1 %vm3183_vm2, %v3182_v10  ;;  %v3015_v44 = vld [vmem:[%s3384_s12 + $0x28] sm:$0xff]  }
 0x26a   : > { %2785 = vmatprep.subr.bf16.mxu1 %v3182_v10 }
 0x26d   : > { %2786 = vmatpush3.bf16.msra.mxu1 %v3008_v45 }
 0x26e   : > { %2797 = vmatprep.subr.bf16.mxu1 %v3182_v10 }
 0x270   : > { %2788 = vmatmul.mubr.msk.bf16.vlgmr.msra.gmra.mxu1 %vm724_vm1, %v3466_v23 }
 0x271   : > { %2799 = vmatprep.mubr.msk.bf16.mxu1 %vm3183_vm2, %v3182_v10 }
 0x320   : > { %v968_v46 = vpop.f32.mrf.mxu1 }
 0x321   : > { %v974_v47 = vmul.f32 0.25, %v968_v46 }
 0x322   : > { %v2759_v48 = vpop.f32.mrf.mxu1 }
 0x323   : > { %v976_v49 = vsel %vm975_vm5, %v974_v47, -inf  ;;  %v3016_v48 = vld [vmem:[%s3384_s12 + $0x20] sm:$0xff]  }
 0x324   : > { %977 = vmax.xlane.f32.xlu1 %v976_v49  ;;  %v971_v50 = vpop.f32.mrf.mxu1 }
 0x326   : > { %v2760_v51 = vpop.f32.mrf.mxu1 }
 0x327   : > { %v3017_v51 = vld [vmem:[%s3394_s27 + $0x28] sm:$0xff]  }
 0x328   : > { %v1090_v52 = vpop.f32.mrf.mxu1 }
 0x329   : > { %v1210_v21 = vpack.c.bf16 %v1090_v52, %v1090_v52 }
 0x32a   : > { %v2773_v53 = vpop.f32.mrf.mxu1 }
 0x32c   : > { %v1093_v54 = vpop.f32.mrf.mxu1 }
 0x32d   : > { %v3018_v54 = vld [vmem:[%s3394_s27 + $0x20] sm:$0xff]  }
 0x32e   : > { %v2774_v55 = vpop.f32.mrf.mxu1 }
 0x330   : > { %v1204_v56 = vpop.f32.mrf.mxu1 }
 0x331   : > { %v1271_v57 = vpack.c.bf16 %v1204_v56, %v1204_v56 }
 0x332   : > { %v2789_v58 = vpop.f32.mrf.mxu1 }
 0x333   : > { %v1276_v59 = vsel %vm992_vm4, %v1271_v57, 0 }
 0x334   : > { %v1207_v60 = vpop.f32.mrf.mxu1  ;;  %2798 = vmatpush3.bf16.msra.mxu1 %v1276_v59 }
 0x335   : > { %2809 = vmatprep.subr.bf16.mxu1 %v3182_v10 }
 0x336   : > { %v2790_v61 = vpop.f32.mrf.mxu1 }
 0x3ad   : > { %v978_v62 = vpop.xlane.xlu1 %977 }
 0x3ae   : > { %v979_v63 = vsub.f32 %v974_v47, %v978_v62 }
 0x3b0   : > { %v980_v0 = vmul.f32 1.442695, %v979_v63 }
 0x3b2   : > { %3035 = vpow2.f32 %v980_v0 }
 0x3bf   : > { %v3036_v2 = vpop.eup %3035 }
 0x3c0   : > { %v982_v3 = vsel %vm975_vm5, %v3036_v2, 0.0 }
 0x3c1   : > { %983 = vadd.xlane.f32.xlu1 %v982_v3 }
 0x44a   : > { %v984_v4 = vpop.xlane.xlu1 %983 }
 0x44b   : > { %3037 = vrcp.f32 %v984_v4 }
 0x458   : > { %v3038_v5 = vpop.eup %3037 }
 0x459   : > { %v986_v6 = vmul.f32 %v3038_v5, %v3036_v2 }
 0x45b   : > { %v987_v8 = vpack.c.bf16 %v986_v6, %v986_v6 }
 0x45d   : > { %2764 = vmatmul.mubr.msk.bf16.vlgmr.msra.gmra.mxu0 %vm975_vm5, %v987_v8 }
 0x45e   : > { %2776 = vmatpush3.bf16.msra.mxu0 %v3009_v7  ;;  %2779 = vmatprep.mubr.msk.bf16.mxu0 %vm3183_vm2, %v3182_v10 }
 0x45f   : > { %2777 = vmatprep.subr.bf16.mxu0 %v3182_v10 }
 0x462   : > { %2778 = vmatpush3.bf16.msra.mxu0 %v3010_v9 }
 0x463   : > { %2791 = vmatprep.subr.bf16.mxu0 %v3182_v10 }
 0x465   : > { %2780 = vmatmul.mubr.msk.bf16.vlgmr.msra.gmra.mxu0 %vm724_vm1, %v3466_v23 }
 0x466   : > { %2793 = vmatprep.mubr.msk.bf16.mxu0 %vm3183_vm2, %v3182_v10 }
 0x51d   : > { %v1030_v11 = vpop.f32.mrf.mxu0 }
 0x51e   : > { %v1036_v41 = vpack.c.bf16 %v1030_v11, %v1030_v11 }
 0x51f   : > { %v2765_v12 = vpop.f32.mrf.mxu0 }
 0x521   : > { %v1033_v13 = vpop.f32.mrf.mxu0 }
 0x523   : > { %v2766_v14 = vpop.f32.mrf.mxu0 }
 0x525   : > { %v1147_v15 = vpop.f32.mrf.mxu0 }
 0x526   : > { %v1211_v16 = vpack.c.bf16 %v1147_v15, %v1147_v15 }
 0x527   : > { %v2781_v17 = vpop.f32.mrf.mxu0 }
 0x528   : > { %v1216_v18 = vsel %vm927_vm3, %v1211_v16, 0 }
 0x529   : > { %v1150_v19 = vpop.f32.mrf.mxu0  ;;  %2792 = vmatpush3.bf16.xpose.msra.mxu0 %v1216_v18 }
 0x52a   : > { %2803 = vmatprep.subr.bf16.mxu0 %v3182_v10 }
 0x52b   : > { %v2782_v20 = vpop.f32.mrf.mxu0 }
 0x530   : > { %2794 = vmatmul.mubr.msk.bf16.vlgmr.msra.gmra.mxu0 %vm927_vm3, %v1210_v21 }
 0x531   : > { %2805 = vmatprep.mubr.msk.bf16.mxu0 %vm3183_vm2, %v3182_v10  ;;  %2804 = vmatpush3.bf16.msra.mxu0 %v3014_v34  ;;  %v3021_v34 = vld [vmem:[%s3394_s27 + $0x38] sm:$0xff]  }
 0x532   : > { %2815 = vmatprep.subr.bf16.mxu0 %v3182_v10 }
 0x5f0   : > { %v1252_v22 = vpop.f32.mrf.mxu0 }
 0x5f1   : > { %v1258_v24 = vmul.f32 0.25, %v1252_v22 }
 0x5f2   : > { %v2795_v25 = vpop.f32.mrf.mxu0 }
 0x5f3   : > { %v1259_v26 = vsel %vm975_vm5, %v1258_v24, -inf }
 0x5f4   : > { %1260 = vmax.xlane.f32.xlu0 %v1259_v26  ;;  %v1255_v27 = vpop.f32.mrf.mxu0 }
 0x5f5   : > { %v3023_v27 = vld [vmem:[%s3789_s19 + $0x10] sm:$0xff]  }
 0x5f6   : > { %v2796_v28 = vpop.f32.mrf.mxu0 }
 0x67d   : > { %v1261_v29 = vpop.xlane.xlu0 %1260 }
 0x67e   : > { %v1262_v30 = vsub.f32 %v1258_v24, %v1261_v29 }
 0x680   : > { %v1263_v31 = vmul.f32 1.442695, %v1262_v30 }
 0x682   : > { %3039 = vpow2.f32 %v1263_v31  ;;  %v3019_v31 = vld [vmem:[%s3384_s12 + $0x38] sm:$0xff]  }
 0x68f   : > { %v3040_v32 = vpop.eup %3039 }
 0x690   : > { %v1265_v33 = vsel %vm975_vm5, %v3040_v32, 0.0 }
 0x691   : > { %1266 = vadd.xlane.f32.xlu1 %v1265_v33  ;;  %v3020_v33 = vld [vmem:[%s3384_s12 + $0x30] sm:$0xff]   ;;  %s3790_s12 = sld [smem:[#allocation28_spill]] }
 0x697   : > { %s3791_s30 = scalar_lea.vmem %s3790_s12, %s3369_s10 }
 0x71a   : > { %v1267_v35 = vpop.xlane.xlu1 %1266 }
 0x71b   : > { %3041 = vrcp.f32 %v1267_v35  ;;  %v3022_v35 = vld [vmem:[%s3394_s27 + $0x30] sm:$0xff]  }
 0x728   : > { %v3042_v36 = vpop.eup %3041 }
 0x729   : > { %v1269_v37 = vmul.f32 %v3042_v36, %v3040_v32 }
 0x72b   : > { %v1270_v39 = vpack.c.bf16 %v1269_v37, %v1269_v37  ;;  %v3024_v37 = vld [vmem:[%s3389_s22 + $0x38] sm:$0xff]  }
 0x72d   : > { %2800 = vmatmul.mubr.msk.bf16.vlgmr.msra.gmra.mxu1 %vm975_vm5, %v1270_v39 }
 0x72e   : > { %2810 = vmatpush3.bf16.msra.mxu1 %v3011_v38  ;;  %2811 = vmatprep.mubr.msk.bf16.mxu1 %vm3183_vm2, %v3182_v10 }
 0x72f   : > { %2823 = vmatprep.subr.bf16.mxu1 %v3182_v10 }
 0x735   : > { %2812 = vmatmul.mubr.msk.bf16.vlgmr.msra.gmra.mxu1 %vm927_vm3, %v1036_v41  ;;  %v3025_v41 = vld [vmem:[%s3389_s22 + $0x30] sm:$0xff]  }
 0x736   : > { %2824 = vmatpush3.bf16.msra.mxu1 %v3012_v40  ;;  %2827 = vmatprep.mubr.msk.bf16.mxu1 %vm3183_vm2, %v3182_v10 }
 0x737   : > { %2825 = vmatprep.subr.bf16.mxu1 %v3182_v10 }
 0x73a   : > { %2826 = vmatpush3.bf16.msra.mxu1 %v3013_v42 }
 0x73b   : > { %2839 = vmatprep.subr.bf16.mxu1 %v3182_v10 }
 0x73d   : > { %2828 = vmatmul.mubr.msk.bf16.vlgmr.msra.gmra.mxu1 %vm724_vm1, %v3466_v23 }
 0x73e   : > { %2841 = vmatprep.mubr.msk.bf16.mxu1 %vm3183_vm2, %v3182_v10 }
 0x7ed   : > { %v1312_v43 = vpop.f32.mrf.mxu1 }
 0x7ee   : > { %v1318_v45 = vpack.c.bf16 %v1312_v43, %v1312_v43 }
 0x7ef   : > { %v2801_v46 = vpop.f32.mrf.mxu1 }
 0x7f0   : > { %2806 = vmatmul.mubr.msk.bf16.vlgmr.msra.gmra.mxu0 %vm927_vm3, %v1318_v45 }
 0x7f1   : > { %v1315_v47 = vpop.f32.mrf.mxu1  ;;  %2816 = vmatpush3.bf16.msra.mxu0 %v3015_v44  ;;  %2819 = vmatprep.mubr.msk.bf16.mxu0 %vm3183_vm2, %v3182_v10 }
 0x7f2   : > { %2817 = vmatprep.subr.bf16.mxu0 %v3182_v10 }
 0x7f3   : > { %v2802_v49 = vpop.f32.mrf.mxu1 }
 0x7f5   : > { %v3552_v50 = vpop.f32.mrf.mxu1  ;;  %2818 = vmatpush3.bf16.msra.mxu0 %v3016_v48 }
 0x7f6   : > { %2831 = vmatprep.subr.bf16.mxu0 %v3182_v10 }
 0x7f7   : > { %v2813_v52 = vpop.f32.mrf.mxu1 }
 0x7f8   : > { %2820 = vmatmul.mubr.msk.bf16.vlgmr.msra.gmra.mxu0 %vm724_vm1, %v3466_v23 }
 0x7f9   : > { %v1417_v53 = vpop.f32.mrf.mxu1  ;;  %2832 = vmatpush3.bf16.msra.mxu0 %v3017_v51  ;;  %2835 = vmatprep.mubr.msk.bf16.mxu0 %vm3183_vm2, %v3182_v10 }
 0x7fa   : > { %2833 = vmatprep.subr.bf16.mxu0 %v3182_v10 }
 0x7fb   : > { %v2814_v55 = vpop.f32.mrf.mxu1 }
 0x7fd   : > { %v1528_v56 = vpop.f32.mrf.mxu1  ;;  %2834 = vmatpush3.bf16.msra.mxu0 %v3018_v54 }
 0x7fe   : > { %v1592_v57 = vpack.c.bf16 %v1528_v56, %v1528_v56  ;;  %2845 = vmatprep.subr.bf16.mxu0 %v3182_v10 }
 0x7ff   : > { %v2829_v58 = vpop.f32.mrf.mxu1 }
 0x800   : > { %v1597_v59 = vsel %vm927_vm3, %v1592_v57, 0  ;;  %2836 = vmatmul.mubr.msk.bf16.vlgmr.msra.gmra.mxu0 %vm724_vm1, %v3466_v23 }
 0x801   : > { %v1531_v60 = vpop.f32.mrf.mxu1  ;;  %2840 = vmatpush3.bf16.xpose.msra.mxu1 %v1597_v59  ;;  %2847 = vmatprep.mubr.msk.bf16.mxu0 %vm3183_vm2, %v3182_v10 }
 0x802   : > { %2851 = vmatprep.subr.bf16.mxu1 %v3182_v10 }
 0x803   : > { %v2830_v61 = vpop.f32.mrf.mxu1 }
 0x8b0   : > { %v3569_v62 = vpop.f32.mrf.mxu0 }
 0x8b1   : > { %v1415_v54 = vadd.f32 %v3552_v50, %v3569_v62 }
 0x8b2   : > { %v2807_v63 = vpop.f32.mrf.mxu0 }
 0x8b4   : > { %v1368_v0 = vpop.f32.mrf.mxu0 }
 0x8b6   : > { %v2808_v2 = vpop.f32.mrf.mxu0 }
 0x8b8   : > { %v1471_v3 = vpop.f32.mrf.mxu0 }
 0x8b9   : > { %v1591_v4 = vpack.c.bf16 %v1471_v3, %v1471_v3 }
 0x8ba   : > { %v2821_v5 = vpop.f32.mrf.mxu0 }
 0x8bb   : > { %2842 = vmatmul.mubr.msk.bf16.vlgmr.msra.gmra.mxu1 %vm927_vm3, %v1591_v4 }
 0x8bc   : > { %v1474_v6 = vpop.f32.mrf.mxu0  ;;  %2853 = vmatprep.mubr.msk.bf16.mxu1 %vm3183_vm2, %v3182_v10  ;;  %2852 = vmatpush3.bf16.msra.mxu1 %v3023_v27  ;;  %v2639_v27 = vld [vmem:[%s3791_s30] ss:$0 sm:$0xff] }
 0x8bd   : > { %2865 = vmatprep.subr.bf16.mxu1 %v3182_v10 }
 0x8be   : > { %v2822_v7 = vpop.f32.mrf.mxu0 }
 0x8c0   : > { %v1585_v8 = vpop.f32.mrf.mxu0 }
 0x8c1   : > { %v1652_v9 = vpack.c.bf16 %v1585_v8, %v1585_v8 }
 0x8c2   : > { %v2837_v11 = vpop.f32.mrf.mxu0 }
 0x8c3   : > { %v1657_v12 = vsel %vm992_vm4, %v1652_v9, 0 }
 0x8c4   : > { %v1588_v13 = vpop.f32.mrf.mxu0  ;;  %2846 = vmatpush3.bf16.msra.mxu0 %v1657_v12 }
 0x8c5   : > { %2857 = vmatprep.subr.bf16.mxu0 %v3182_v10 }
 0x8c6   : > { %v2838_v14 = vpop.f32.mrf.mxu0 }
 0x8c7   : > { %v3026_v14 = vld [vmem:[%s3789_s19 + $0x18] sm:$0xff]  }
 0x97b   : > { %v1633_v15 = vpop.f32.mrf.mxu1 }
 0x97c   : > { %v1639_v16 = vmul.f32 0.25, %v1633_v15 }
 0x97d   : > { %v2843_v17 = vpop.f32.mrf.mxu1 }
 0x97e   : > { %v1640_v18 = vsel %vm975_vm5, %v1639_v16, -inf }
 0x97f   : > { %1641 = vmax.xlane.f32.xlu0 %v1640_v18  ;;  %v1636_v19 = vpop.f32.mrf.mxu1 }
 0x981   : > { %v2844_v20 = vpop.f32.mrf.mxu1 }
 0xa08   : > { %v1642_v21 = vpop.xlane.xlu0 %1641 }
 0xa09   : > { %v1643_v22 = vsub.f32 %v1639_v16, %v1642_v21 }
 0xa0b   : > { %v1644_v24 = vmul.f32 1.442695, %v1643_v22 }
 0xa0d   : > { %3043 = vpow2.f32 %v1644_v24 }
 0xa1a   : > { %v3044_v25 = vpop.eup %3043 }
 0xa1b   : > { %v1646_v26 = vsel %vm975_vm5, %v3044_v25, 0.0 }
 0xa1c   : > { %1647 = vadd.xlane.f32.xlu1 %v1646_v26 }
 0xaa5   : > { %v1648_v28 = vpop.xlane.xlu1 %1647 }
 0xaa6   : > { %3045 = vrcp.f32 %v1648_v28 }
 0xab3   : > { %v3046_v29 = vpop.eup %3045 }
 0xab4   : > { %v1650_v30 = vmul.f32 %v3046_v29, %v3044_v25 }
 0xab6   : > { %v1651_v32 = vpack.c.bf16 %v1650_v30, %v1650_v30 }
 0xab8   : > { %2848 = vmatmul.mubr.msk.bf16.vlgmr.msra.gmra.mxu0 %vm975_vm5, %v1651_v32 }
 0xab9   : > { %2858 = vmatpush3.bf16.msra.mxu0 %v3019_v31  ;;  %2861 = vmatprep.mubr.msk.bf16.mxu0 %vm3183_vm2, %v3182_v10 }
 0xaba   : > { %2859 = vmatprep.subr.bf16.mxu0 %v3182_v10 }
 0xabd   : > { %2860 = vmatpush3.bf16.msra.mxu0 %v3020_v33 }
 0xabe   : > { %2873 = vmatprep.subr.bf16.mxu0 %v3182_v10 }
 0xac0   : > { %2862 = vmatmul.mubr.msk.bf16.vlgmr.msra.gmra.mxu0 %vm724_vm1, %v3466_v23 }
 0xac1   : > { %2874 = vmatpush3.bf16.msra.mxu0 %v3021_v34  ;;  %2877 = vmatprep.mubr.msk.bf16.mxu0 %vm3183_vm2, %v3182_v10 }
 0xac2   : > { %2875 = vmatprep.subr.bf16.mxu0 %v3182_v10 }
 0xac5   : > { %2876 = vmatpush3.bf16.msra.mxu0 %v3022_v35 }
 0xac6   : > { %2887 = vmatprep.subr.bf16.mxu0 %v3182_v10 }
 0xac8   : > { %2878 = vmatmul.mubr.msk.bf16.vlgmr.msra.gmra.mxu0 %vm724_vm1, %v3466_v23 }
 0xac9   : > { %2889 = vmatprep.mubr.msk.bf16.mxu0 %vm3183_vm2, %v3182_v10 }
 0xb78   : > { %v1693_v36 = vpop.f32.mrf.mxu0 }
 0xb79   : > { %v1699_v38 = vpack.c.bf16 %v1693_v36, %v1693_v36 }
 0xb7a   : > { %v2849_v39 = vpop.f32.mrf.mxu0 }
 0xb7b   : > { %2854 = vmatmul.mubr.msk.bf16.vlgmr.msra.gmra.mxu1 %vm927_vm3, %v1699_v38  ;;  %v3027_v39 = vld [vmem:[%s3417_s29 + $0x8] sm:$0xff]  }
 0xb7c   : > { %v1696_v40 = vpop.f32.mrf.mxu0  ;;  %2866 = vmatpush3.bf16.msra.mxu1 %v3024_v37  ;;  %2869 = vmatprep.mubr.msk.bf16.mxu1 %vm3183_vm2, %v3182_v10 }
 0xb7d   : > { %2867 = vmatprep.subr.bf16.mxu1 %v3182_v10  ;;  %v3028_v40 = vld [vmem:[%s3417_s29] sm:$0xff]  }
 0xb7e   : > { %v2850_v42 = vpop.f32.mrf.mxu0 }
 0xb80   : > { %v1804_v43 = vpop.f32.mrf.mxu0  ;;  %2868 = vmatpush3.bf16.msra.mxu1 %v3025_v41 }
 0xb81   : > { %2881 = vmatprep.subr.bf16.mxu1 %v3182_v10  ;;  %v1924_v3 = vpack.c.bf16 %v1804_v43, %v1804_v43 }
 0xb82   : > { %v2863_v44 = vpop.f32.mrf.mxu0 }
 0xb83   : > { %2870 = vmatmul.mubr.msk.bf16.vlgmr.msra.gmra.mxu1 %vm724_vm1, %v3466_v23  ;;  %v2640_v44 = vld [vmem:[%s3792_s18] ss:$0 sm:$0xff] }
 0xb84   : > { %v1807_v45 = vpop.f32.mrf.mxu0  ;;  %2883 = vmatprep.mubr.msk.bf16.mxu1 %vm3183_vm2, %v3182_v10 }
 0xb86   : > { %v2864_v46 = vpop.f32.mrf.mxu0 }
 0xb87   : > { %v2641_v46 = vld [vmem:[%s696_s28] ss:$0 sm:$0xff] }
 0xb88   : > { %v1918_v47 = vpop.f32.mrf.mxu0 }
 0xb89   : > { %v1985_v48 = vpack.c.bf16 %v1918_v47, %v1918_v47 }
 0xb8a   : > { %v2879_v49 = vpop.f32.mrf.mxu0 }
 0xb8b   : > { %v1990_v51 = vsel %vm992_vm4, %v1985_v48, 0 }
 0xb8c   : > { %v1921_v52 = vpop.f32.mrf.mxu0  ;;  %2888 = vmatpush3.bf16.msra.mxu0 %v1990_v51  ;;  %v3029_v51 = vld [vmem:[%s3426_s7 + $0x18] sm:$0xff]  }
 0xb8d   : > { %2899 = vmatprep.subr.bf16.mxu0 %v3182_v10  ;;  %v3030_v52 = vld [vmem:[%s3426_s7 + $0x10] sm:$0xff]  }
 0xb8e   : > { %v2880_v53 = vpop.f32.mrf.mxu0 }
 0xb8f   : > { %v3031_v53 = vld [vmem:[%s3426_s7 + $0x8] sm:$0xff]  }
 0xc3b   : > { %v1746_v55 = vpop.f32.mrf.mxu1 }
 0xc3c   : > { %v1752_v23 = vadd.f32 %v1746_v55, %v1415_v54  ;;  %v3032_v54 = vld [vmem:[%s3426_s7] sm:$0xff]  }
 0xc3d   : > { %v2855_v56 = vpop.f32.mrf.mxu1  ;;  %v2642_v55 = vld [vmem:[%s704_s25] ss:$0 sm:$0xff] }
 0xc3f   : > { %v1749_v57 = vpop.f32.mrf.mxu1 }
 0xc41   : > { %v2856_v58 = vpop.f32.mrf.mxu1 }
 0xc43   : > { %v1861_v59 = vpop.f32.mrf.mxu1 }
 0xc44   : > { %v1925_v60 = vpack.c.bf16 %v1861_v59, %v1861_v59 }
 0xc45   : > { %v2871_v61 = vpop.f32.mrf.mxu1 }
 0xc46   : > { %v1930_v63 = vsel %vm927_vm3, %v1925_v60, 0 }
 0xc47   : > { %v1864_v0 = vpop.f32.mrf.mxu1  ;;  %2882 = vmatpush3.bf16.xpose.msra.mxu1 %v1930_v63 }
 0xc48   : > { %2893 = vmatprep.subr.bf16.mxu1 %v3182_v10 }
 0xc49   : > { %v2872_v2 = vpop.f32.mrf.mxu1 }
 0xc4e   : > { %2884 = vmatmul.mubr.msk.bf16.vlgmr.msra.gmra.mxu1 %vm927_vm3, %v1924_v3 }
 0xc4f   : > { %2895 = vmatprep.mubr.msk.bf16.mxu1 %vm3183_vm2, %v3182_v10  ;;  %2894 = vmatpush3.bf16.msra.mxu1 %v3026_v14 }
 0xc50   : > { %2907 = vmatprep.subr.bf16.mxu1 %v3182_v10 }
 0xd0e   : > { %v1966_v50 = vpop.f32.mrf.mxu1 }
 0xd0f   : > { %v1972_v62 = vmul.f32 0.25, %v1966_v50 }
 0xd10   : > { %v2885_v4 = vpop.f32.mrf.mxu1 }
 0xd11   : > { %v1973_v5 = vsel %vm975_vm5, %v1972_v62, -inf }
 0xd12   : > { %1974 = vmax.xlane.f32.xlu0 %v1973_v5  ;;  %v1969_v6 = vpop.f32.mrf.mxu1  ;;  %v2646_v5 = vld [vmem:[%s712_s4] ss:$0 sm:$0xff] }
 0xd14   : > { %v2886_v7 = vpop.f32.mrf.mxu1 }
 0xd9b   : > { %v1975_v8 = vpop.xlane.xlu0 %1974 }
 0xd9c   : > { %v1976_v9 = vsub.f32 %v1972_v62, %v1975_v8 }
 0xd9e   : > { %v1977_v11 = vmul.f32 1.442695, %v1976_v9 }
 0xda0   : > { %3047 = vpow2.f32 %v1977_v11 }
 0xdad   : > { %v3048_v12 = vpop.eup %3047 }
 0xdae   : > { %v1979_v13 = vsel %vm975_vm5, %v3048_v12, 0.0 }
 0xdaf   : > { %1980 = vadd.xlane.f32.xlu1 %v1979_v13 }
 0xe38   : > { %v1981_v15 = vpop.xlane.xlu1 %1980 }
 0xe39   : > { %3049 = vrcp.f32 %v1981_v15 }
 0xe46   : > { %v3050_v16 = vpop.eup %3049 }
 0xe47   : > { %v1983_v17 = vmul.f32 %v3050_v16, %v3048_v12 }
 0xe49   : > { %v1984_v18 = vpack.c.bf16 %v1983_v17, %v1983_v17 }
 0xe4b   : > { %2890 = vmatmul.mubr.msk.bf16.vlgmr.msra.gmra.mxu0 %vm975_vm5, %v1984_v18 }
 0xe4c   : > { %2903 = vmatprep.mubr.msk.bf16.mxu0 %vm3183_vm2, %v3182_v10  ;;  %2900 = vmatpush3.bf16.msra.mxu0 %v3027_v39 }
 0xe4d   : > { %2901 = vmatprep.subr.bf16.mxu0 %v3182_v10 }
 0xe50   : > { %2902 = vmatpush3.bf16.msra.mxu0 %v3028_v40 }
 0xf0b   : > { %v2026_v19 = vpop.f32.mrf.mxu0 }
 0xf0c   : > { %v2032_v20 = vpack.c.bf16 %v2026_v19, %v2026_v19 }
 0xf0d   : > { %v2891_v21 = vpop.f32.mrf.mxu0 }
 0xf0e   : > { %2896 = vmatmul.mubr.msk.bf16.vlgmr.msra.gmra.mxu1 %vm927_vm3, %v2032_v20 }
 0xf0f   : > { %v2029_v22 = vpop.f32.mrf.mxu0  ;;  %2915 = vmatprep.mubr.msk.bf16.mxu1 %vm3183_vm2, %v3182_v10  ;;  %2908 = vmatpush3.bf16.msra.mxu1 %v3029_v51 }
 0xf10   : > { %2909 = vmatprep.subr.bf16.mxu1 %v3182_v10 }
 0xf11   : > { %v2892_v24 = vpop.f32.mrf.mxu0 }
 0xf13   : > { %2910 = vmatpush3.bf16.msra.mxu1 %v3030_v52 }
 0xf14   : > { %2911 = vmatprep.subr.bf16.mxu1 %v3182_v10 }
 0xf17   : > { %2912 = vmatpush3.bf16.msra.mxu1 %v3031_v53 }
 0xf18   : > { %2913 = vmatprep.subr.bf16.mxu1 %v3182_v10 }
 0xf1b   : > { %2914 = vmatpush3.bf16.msra.mxu1 %v3032_v54 }
 0xfce   : > { %v2079_v25 = vpop.f32.mrf.mxu1 }
 0xfcf   : > { %v2085_v26 = vadd.f32 %v2079_v25, %v1752_v23 }
 0xfd0   : > { %v2897_v28 = vpop.f32.mrf.mxu1 }
 0xfd1   : > { %v2086_v29 = vadd.f32 %v2085_v26, %v3435_v1 }
 0xfd2   : > { %v2082_v30 = vpop.f32.mrf.mxu1 }
 0xfd3   : > { %v2094_v31 = vadd.f32 %v2639_v27, %v2086_v29 }
 0xfd4   : > { %v2898_v32 = vpop.f32.mrf.mxu1 }
 0xfd5   : > { %v2097_v33 = vsel %vm724_vm1, %v2094_v31, 0.0 }
 0xfd6   : > { %2098 = vadd.xlane.f32.xlu0 %v2097_v33 }
0x105f   : > { %v2099_v34 = vpop.xlane.xlu0 %2098 }
0x1060   : > { %v2100_v35 = vmul.f32 0.03125, %v2099_v34 }
0x1062   : > { %v2101_v36 = vsub.f32 %v2094_v31, %v2100_v35 }
0x1064   : > { %v2102_v37 = vmul.f32 %v2101_v36, %v2101_v36 }
0x1066   : > { %v2103_v38 = vsel %vm724_vm1, %v2102_v37, 0.0 }
0x1067   : > { %2104 = vadd.xlane.f32.xlu1 %v2103_v38 }
0x10f0   : > { %v2105_v1 = vpop.xlane.xlu1 %2104 }
0x10f1   : > { %v2106_v41 = vmul.f32 0.03125, %v2105_v1 }
0x10f3   : > { %v2107_v42 = vadd.f32 1e-05, %v2106_v41 }
0x10f5   : > { %3051 = vrsqrt.f32 %v2107_v42 }
0x1102   : > { %v3052_v43 = vpop.eup %3051 }
0x1103   : > { %v2109_v45 = vmul.f32 %v3052_v43, %v2101_v36 }
0x1105   : > { %v2116_v47 = vmul.f32 %v2640_v44, %v2109_v45 }
0x1107   : > { %v2123_v48 = vadd.f32 %v2641_v46, %v2116_v47 }
0x1109   : > { %v2124_v49 = vpack.c.bf16 %v2123_v48, %v2123_v48 }
0x110b   : > { %2904 = vmatmul.mubr.msk.bf16.vlgmr.msra.gmra.mxu0 %vm724_vm1, %v2124_v49 }
0x11cb   : > { %v2185_v23 = vpop.f32.mrf.mxu0 }
0x11cc   : > { %v2186_v56 = vadd.f32 %v2642_v55, %v2185_v23 }
0x11cd   : > { %v2905_v57 = vpop.f32.mrf.mxu0 }
0x11ce   : > { %v2192_v58 = vmul.f32 0.044715, %v2186_v56  ;;  %v2191_v10 = vmul.f32 0.5, %v2186_v56 }
0x11cf   : > { %v2188_v59 = vpop.f32.mrf.mxu0 }
0x11d0   : > { %v2193_v60 = vmul.f32 %v2192_v58, %v2186_v56 }
0x11d1   : > { %v2906_v61 = vpop.f32.mrf.mxu0 }
0x11d2   : > { %v2194_v63 = vmul.f32 %v2193_v60, %v2186_v56 }
0x11d4   : > { %v2195_v0 = vadd.f32 %v2194_v63, %v2186_v56 }
0x11d6   : > { %v2196_v2 = vmul.f32 0.7978846, %v2195_v0 }
0x11d8   : > { %3053 = vtanh.f32 %v2196_v2 }
0x11e5   : > { %v3054_v3 = vpop.eup %3053 }
0x11e6   : > { %v2198_v50 = vadd.f32 1.0, %v3054_v3 }
0x11e8   : > { %v2199_v62 = vmul.f32 %v2198_v50, %v2191_v10 }
0x11ea   : > { %v2200_v4 = vpack.c.bf16 %v2199_v62, %v2199_v62 }
0x11ec   : > { %2916 = vmatmul.mubr.msk.bf16.vlgmr.msra.gmra.mxu1 %vm2240_vm6, %v2200_v4 }
0x12ac   : > { %v2278_v6 = vpop.f32.mrf.mxu1 }
0x12ad   : > { %v2279_v7 = vadd.f32 %v2646_v5, %v2278_v6 }
0x12ae   : > { %v2917_v8 = vpop.f32.mrf.mxu1  ;;  %2289 = sbr.rel (%p2652_p11) target bundleno = 4788 (0x12b4), region = 88 }
0x12af   : > { %v2284_v9 = vadd.f32 %v2279_v7, %v2094_v31 }
0x12b0   : > { %v2281_v11 = vpop.f32.mrf.mxu1 }
0x12b1   : > { %2285 = vst.msk [vmem:[#allocation2] sm:$0xff] %vm724_vm1, %v2284_v9 }
0x12b2   : > { %v2918_v12 = vpop.f32.mrf.mxu1 }
0x12b3   : > { %2290 = vst.msk [vmem:[%s3432_s24] sm:$0xff] %vm724_vm1, %v2284_v9 }
0x12b4 PF: > { %s3795_s26 = sld [smem:[#allocation12_spill]]  ;;  %s2305_s0 = sshll.u32 %s3432_s24, 4  ;;  %s2306_s0 = int_to_ptr.vmem [resolvable:$true] %s2305_s0 }
0x12b5   : > { %s3796_s5 = sld [smem:[#allocation21_spill]]  ;;  %s3083_s22 = scalar_lea.vmem %s2306_s0, 128 }
0x12b6   : > { %s3798_s21 = sld [smem:[#allocation33_spill]]  ;;  %p3084_p1 = scmp.ne.s32.totalorder %s2306_s0, %s3083_s22 }
0x12b7   : > { %s3184_s16 = smov [#allocation6]  }
0x12b8   : > { %p3085_p2 = pnand %p3084_p1, %p3323_p10  ;;  %s3087_s27 = sshll.u32 %s3184_s16, 4  ;;  %s3088_s27 = int_to_ptr.vmem [resolvable:$false] %s3087_s27 }
0x12b9   : > { %s3089_s12 = scalar_lea.vmem %s3088_s27, 256  ;;  %p3090_p5 = scmp.lt.s32.totalorder %s2306_s0, %s3088_s27 }
0x12ba   : > { %s2654_s4 = sshll.u32 %s3795_s26, 7  ;;  %p3086_p4 = pneg %p3085_p2 }
0x12bb   : > { %s2292_s19 = scalar_lea.sflag [#allocation5], %s3796_s5  ;;  %p3091_p6 = scmp.lt.s32.totalorder %s3089_s12, %s3083_s22 }
0x12bc   : > { %s2303_s11 = scalar_lea.hbm %s3798_s21, %s2654_s4 }
0x12bd   : > { %p3092_p7 = por %p3091_p6, %p3090_p5 }
0x12bf   : > { %p3093_p8 = pnand %p3092_p7, %p3086_p4 }
0x12c1   : > { %3096 = shalt.err (!%p3093_p8)
}
0x12c2   : > { %s3097_s30 = scalar_lea.hbm %s2303_s11, 128  ;;  %s3101_s14 = scalar_lea.hbm %s3798_s21, 256 }
0x12c3   : > { %p3098_p12 = scmp.ne.s32.totalorder %s2303_s11, %s3097_s30  ;;  %p3102_p0 = scmp.lt.s32.totalorder %s2303_s11, %s3798_s21 }
0x12c4   : > { %p3103_p9 = scmp.lt.s32.totalorder %s3101_s14, %s3097_s30 }
0x12c5   : > { %p3099_p3 = pnand %p3098_p12, %p3323_p10 }
0x12c6   : > { %p3104_p11 = por %p3103_p9, %p3102_p0 }
0x12c7   : > { %p3100_p13 = pneg %p3099_p3 }
0x12c9   : > { %p3105_p1 = pnand %p3104_p11, %p3100_p13 }
0x12cb   : > { %3108 = shalt.err (!%p3105_p1)
}
0x12cc   : > { %2921 = dma.vmem_to_hbm [thread:$0]  (%p3323_p10), %s2306_s0, 128, %s2303_s11, %s2292_s19  }
0x12cd PF: > { %s3799_s20 = sld [smem:[#allocation15_spill]] }
0x12ce   : > { %s3800_s28 = sld [smem:[#allocation9_spill]] }
0x12cf   : > { %s3801_s29 = sld [smem:[#allocation19_spill]] }
0x12d3   : > { %p2932_p2 = scmp.ge.s32.totalorder %s3799_s20, 2 }
0x12d4   : > { %s2317_s13 = sand.u32 1, %s3800_s28  }
0x12d5   : > { %p3802_p4 = scmp.ne.s32.totalorder %s3801_s29, 0  ;;  %s2318_s7 = scalar_lea.sflag [#allocation5], %s2317_s13 }
0x12d7   : > { %p2928_p5 = pnand %p2932_p2, %p3802_p4 }
0x12d9   : > { %p2929_p6 = pneg %p2928_p5 }
0x12db   : > { %3146 = dma.done.wait (%p2929_p6), %s2318_s7, 128  }
0x12dc   : > { %3148 = vsyncadd (%p2929_p6), %s2318_s7, 4294967168  ;;  %s30_s20 = sadd.s32 1, %s3799_s20   ;;  %s3803_s29 = sld [smem:[#allocation10_spill]] }
0x12dd   : > { %p27_p7 = scmp.ge.s32.totalorder %s30_s20, 6   ;;  %s3804_s30 = sld [smem:[#allocation11_spill]] }
0x12de   : > { %s3805_s15 = sld [smem:[#allocation20_spill]] }
0x12df   : > { %s3806_s16 = sld [smem:[#allocation13_spill]]  ;;  %29 = sbr.rel (!%p27_p7) target bundleno = 19 (0x13), region = 180 }
0x12e0   : > { %s3807_s17 = sld [smem:[#allocation14_spill]] }
0x12e1   : > { %s3808_s18 = sld [smem:[#allocation16_spill]] }
0x12e2   : > { %s3809_s19 = sld [smem:[#allocation17_spill]] }
0x12e4   :  { %2323 = vsyncpa [#allocation4], 1 }
0x12e5   :  { %2325 = vsyncpa [#allocation4 + $0x1], 1 }
0x12e6   :  { %2326 = vsyncpa [#allocation5], 1 }
0x12e7   :  { %2328 = vsyncpa [#allocation5 + $0x1], 1 }

</bundles_post_ra>
